<compile_context>
chip_gen: v5e
topology: v5e:2x2
jax: 0.10.0
libtpu: 0.0.40
codegen_flags: <defaults>
</compile_context>

<pallas_src>
import jax
import jax.numpy as jnp
import numpy as np
from jax import lax
from jax.experimental import pallas as pl
from jax.experimental.pallas import tpu as pltpu


def _round_up(a, m):
    return ((a + m - 1) // m) * m


def _vmem_limit_bytes():
    # Generation-aware scoped-VMEM limit: 3/4 of physical, capped at 96 MiB
    # (v5e/v6e: 128 MiB physical -> 96 MiB; v7x: 64 MiB physical -> 48 MiB).
    try:
        cap = int(pltpu.get_tpu_info().vmem_capacity_bytes)
    except Exception:
        cap = 64 * 1024 * 1024      # conservative fallback (v7x per-TC)
    return min(cap * 3 // 4, 96 * 1024 * 1024)


# ----------------------------------------------------------------------------
# Parameter preparation (done ONCE, outside the forward pass).
# ----------------------------------------------------------------------------
def prepare_params(p):
    """Fold W_hh into W_ih, split the fused weight by carry half, and pad the
    final-layer columns to a 128-lane multiple for lane-dense output stores."""
    D = p["whh_t"].shape[0]
    # q_star = [h, r]  =>  q_star @ W_ih + h @ W_hh == h @ (W_ih[:D]+W_hh) + r @ W_ih[D:]
    wq = p["wih_t"][:D, :] + p["whh_t"]          # (D, 4D)  acts on q (== h)
    wr = p["wih_t"][D:, :]                        # (D, 4D)  acts on r
    O = p["w3"].shape[1]
    Op = _round_up(O, 128)                        # lane-dense final store
    w3p = jnp.pad(p["w3"], ((0, 0), (0, Op - O)))
    b3p = jnp.pad(p["b3"], ((0, 0), (0, Op - O)))
    return dict(wq=wq, wr=wr, b_lstm=p["b_lstm"].astype(jnp.float32),
                w1=p["w1"], b1=p["b1"], g1=p["g1"], be1=p["be1"],
                w2=p["w2"], b2=p["b2"], g2=p["g2"], be2=p["be2"],
                w3=w3p, b3=b3p, out_size=O)


# ----------------------------------------------------------------------------
# In-kernel bodies (shared between the fused and the tiled kernels).
# ----------------------------------------------------------------------------
def _set2set_body(x, wq, wr, b):
    """x: (TB, N, D) matmul dtype; wq/wr: (D, 4D); b: (1, 4D) f32.
    Returns (q, r) each (TB, D) f32 after N Set2Set steps."""
    TB, N, D = x.shape
    # Hoisted once: JAX does not CSE broadcast_in_dim inside the loop.
    b_full = jnp.broadcast_to(b, (TB, 4 * D)).astype(jnp.float32)
    q0 = jnp.zeros((TB, D), jnp.float32)
    c0 = jnp.zeros((TB, D), jnp.float32)
    r0 = jnp.zeros((TB, D), jnp.float32)

    def step(_, carry):
        q, c, r = carry
        # LSTM cell: two partial matmuls accumulating in f32 (W_hh already folded).
        gates = (jnp.dot(q.astype(wq.dtype), wq, preferred_element_type=jnp.float32)
                 + jnp.dot(r.astype(wr.dtype), wr, preferred_element_type=jnp.float32)
                 + b_full)                                           # (TB, 4D)
        # TODO(synk): gate slices are zero-cost views only when D % 128 == 0;
        # production shapes should keep D a multiple of 128.
        i_g = jax.nn.sigmoid(gates[:, 0:D])
        f_g = jax.nn.sigmoid(gates[:, D:2 * D])
        g_g = jnp.tanh(gates[:, 2 * D:3 * D])
        o_g = jax.nn.sigmoid(gates[:, 3 * D:4 * D])
        c_new = f_g * c + i_g * g_g
        q_new = o_g * jnp.tanh(c_new)                                # (TB, D) f32

        # Attention on VPU (elementwise) + XLU (reductions); MXU stays free.
        # bf16 x promotes to f32 on multiply, so accumulation stays f32.
        e = jnp.sum(x * q_new[:, None, :], axis=-1)                  # (TB, N) f32
        e = e - jnp.max(e, axis=-1, keepdims=True)
        p = jnp.exp(e)                                               # (TB, N)
        denom = jnp.sum(p, axis=-1, keepdims=True)                   # (TB, 1)
        r_new = jnp.sum(p[:, :, None] * x, axis=1)                   # (TB, D) f32
        # One EUP reciprocal per row, folded into r (instead of a divide on (TB,N)).
        r_new = r_new * pl.reciprocal(denom, approx=True)
        return q_new, c_new, r_new

    # Bounded live ranges: full unroll only for tiny N, partial unroll otherwise.
    unroll = True if N <= 8 else 4
    q, _, r = lax.fori_loop(0, N, step, (q0, c0, r0), unroll=unroll)
    return q, r


def _mlp_bn_body(h0, w1, b1, g1, be1, w2, b2, g2, be2, w3, b3):
    """3-layer MLP with training-mode BatchNorm (biased batch stats) after the
    first two ReLUs.  BN fused to a single scale/shift pass."""
    eps = 1e-5

    def bnorm(h, gamma, beta):
        mu = jnp.mean(h, axis=0, keepdims=True)
        var = jnp.mean(h * h, axis=0, keepdims=True) - mu * mu
        scale = gamma * lax.rsqrt(var + eps)
        return h * scale + (beta - mu * scale)

    h1 = bnorm(jnp.maximum(
        jnp.dot(h0, w1, preferred_element_type=jnp.float32) + b1, 0.0), g1, be1)
    h2 = bnorm(jnp.maximum(
        jnp.dot(h1, w2, preferred_element_type=jnp.float32) + b2, 0.0), g2, be2)
    h3 = jnp.maximum(
        jnp.dot(h2, w3, preferred_element_type=jnp.float32) + b3, 0.0)
    return h3


# ----------------------------------------------------------------------------
# Kernels.
# ----------------------------------------------------------------------------
def fused_s2s_mlp_kernel(x_ref, wq_ref, wr_ref, bl_ref,
                         w1_ref, b1_ref, g1_ref, be1_ref,
                         w2_ref, b2_ref, g2_ref, be2_ref,
                         w3_ref, b3_ref, out_ref):
    # Whole (unpadded) batch resident in VMEM: BN batch statistics are exact and
    # q_star never touches HBM.
    q, r = _set2set_body(x_ref[...], wq_ref[...], wr_ref[...], bl_ref[...])
    q_star = jnp.concatenate([q, r], axis=-1)                        # (B, 2D) f32
    h3 = _mlp_bn_body(q_star,
                      w1_ref[...], b1_ref[...], g1_ref[...], be1_ref[...],
                      w2_ref[...], b2_ref[...], g2_ref[...], be2_ref[...],
                      w3_ref[...], b3_ref[...])
    out_ref[...] = h3.astype(out_ref.dtype)                          # lane-dense (B, Op)


def set2set_tiled_kernel(x_ref, wq_ref, wr_ref, bl_ref, qstar_ref):
    q, r = _set2set_body(x_ref[...], wq_ref[...], wr_ref[...], bl_ref[...])
    TB, D = q.shape
    pad = qstar_ref.shape[-1] - 2 * D                                # lane padding to 128x
    parts = [q, r]
    if pad:
        parts.append(jnp.zeros((TB, pad), jnp.float32))
    qstar_ref[...] = jnp.concatenate(parts, axis=-1)


def mlp_bn_kernel(q_ref, w1_ref, b1_ref, g1_ref, be1_ref,
                  w2_ref, b2_ref, g2_ref, be2_ref, w3_ref, b3_ref, out_ref):
    out_ref[...] = _mlp_bn_body(
        q_ref[...],
        w1_ref[...], b1_ref[...], g1_ref[...], be1_ref[...],
        w2_ref[...], b2_ref[...], g2_ref[...], be2_ref[...],
        w3_ref[...], b3_ref[...]).astype(out_ref.dtype)


# ----------------------------------------------------------------------------
# Wrappers.
# ----------------------------------------------------------------------------
def _pick_tile_b(B, N, D, itemsize, vmem_limit, tile_b):
    if tile_b is not None:
        return max(8, _round_up(int(tile_b), 8))
    # Budget ~40% of the scoped limit per x buffer (double-buffered when tiled).
    x_row_bytes = _round_up(N, 8) * _round_up(D, 128) * itemsize
    cap = max(8, (vmem_limit * 2 // 5) // x_row_bytes)
    mxu_rows = 256                      # fills v6e/v7x MXU rows; multiple of v5e's 128
    tb = min(cap, _round_up(B, 8))
    if tb >= mxu_rows:
        tb = (tb // mxu_rows) * mxu_rows
        # Prefer >= 4 grid steps (both TCs busy + pipelining) while MXU-row-full.
        while tb >= 2 * mxu_rows and pl.cdiv(B, tb) < 4:
            tb //= 2
    else:
        tb = _round_up(tb, 8)
    return tb


def _fused_forward(x, prep, vmem_limit, matmul_dtype):
    B, N, D = x.shape
    Op = prep["w3"].shape[1]
    args = (x.astype(matmul_dtype),
            prep["wq"].astype(matmul_dtype), prep["wr"].astype(matmul_dtype),
            prep["b_lstm"],
            prep["w1"], prep["b1"], prep["g1"], prep["be1"],
            prep["w2"], prep["b2"], prep["g2"], prep["be2"],
            prep["w3"], prep["b3"])
    vmem = lambda: pl.BlockSpec(memory_space=pltpu.MemorySpace.VMEM)
    out = pl.pallas_call(
        fused_s2s_mlp_kernel,
        out_shape=jax.ShapeDtypeStruct((B, Op), jnp.float32),
        in_specs=[vmem() for _ in args],
        out_specs=vmem(),
        compiler_params=pltpu.CompilerParams(vmem_limit_bytes=vmem_limit),
    )(*args)
    return out[:, :prep["out_size"]]


def _mlp_bn_pallas(q_star, prep, vmem_limit):
    # TODO(synk): for very large B*H on v7x (64 MiB VMEM), convert this full-batch
    # kernel to a two-pass grid over B with VMEM scratch for per-feature sum /
    # sum-of-squares so BN stats stay exact while tiling.
    B = q_star.shape[0]
    Op = prep["w3"].shape[1]
    args = (q_star,
            prep["w1"], prep["b1"], prep["g1"], prep["be1"],
            prep["w2"], prep["b2"], prep["g2"], prep["be2"],
            prep["w3"], prep["b3"])
    vmem = lambda: pl.BlockSpec(memory_space=pltpu.MemorySpace.VMEM)
    out = pl.pallas_call(
        mlp_bn_kernel,
        out_shape=jax.ShapeDtypeStruct((B, Op), jnp.float32),
        in_specs=[vmem() for _ in args],
        out_specs=vmem(),
        compiler_params=pltpu.CompilerParams(vmem_limit_bytes=vmem_limit),
    )(*args)
    return out[:, :prep["out_size"]]


def _tiled_forward(x, prep, tb, vmem_limit, matmul_dtype):
    B, N, D = x.shape
    Bp = _round_up(B, tb)
    if Bp != B:
        x = jnp.pad(x, ((0, Bp - B), (0, 0), (0, 0)))   # zero rows: benign, sliced off
    xd = x.astype(matmul_dtype)
    wq = prep["wq"].astype(matmul_dtype)
    wr = prep["wr"].astype(matmul_dtype)
    D2p = _round_up(2 * D, 128)                          # lane-dense q_star store

    q_star = pl.pallas_call(
        set2set_tiled_kernel,
        out_shape=jax.ShapeDtypeStruct((Bp, D2p), jnp.float32),
        grid_spec=pltpu.PrefetchScalarGridSpec(
            num_scalar_prefetch=0,
            grid=(Bp // tb,),
            in_specs=[
                pl.BlockSpec((tb, N, D), lambda i: (i, 0, 0)),
                pl.BlockSpec((D, 4 * D), lambda i: (0, 0)),     # resident weights
                pl.BlockSpec((D, 4 * D), lambda i: (0, 0)),
                pl.BlockSpec((1, 4 * D), lambda i: (0, 0)),
            ],
            out_specs=pl.BlockSpec((tb, D2p), lambda i: (i, 0)),
        ),
        compiler_params=pltpu.CompilerParams(
            dimension_semantics=("parallel",),   # shards batch tiles across TCs on v7x
            vmem_limit_bytes=vmem_limit,
        ),
    )(xd, wq, wr, prep["b_lstm"])

    # BatchNorm needs full-batch statistics -> small full-batch epilogue kernel.
    return _mlp_bn_pallas(q_star[:B, :2 * D], prep, vmem_limit)


def s2s_readout(x, prep, *, tile_b=None, matmul_dtype=jnp.bfloat16):
    B, N, D = x.shape
    vmem_limit = _vmem_limit_bytes()
    tb = _pick_tile_b(B, N, D, jnp.dtype(matmul_dtype).itemsize, vmem_limit, tile_b)
    if B <= tb:
        # Whole batch in one tile: single fused kernel, no padding, exact BN stats.
        return _fused_forward(x, prep, vmem_limit, matmul_dtype)
    return _tiled_forward(x, prep, tb, vmem_limit, matmul_dtype)


# ----------------------------------------------------------------------------
# Pure-JAX reference mirroring the PyTorch forward (uses the RAW parameters).
# ----------------------------------------------------------------------------
def s2s_readout_reference(x, p):
    B, N, D = x.shape
    h = jnp.zeros((B, D), jnp.float32)
    c = jnp.zeros((B, D), jnp.float32)
    qs = jnp.zeros((B, 2 * D), jnp.float32)
    for _ in range(N):
        gates = qs @ p["wih_t"] + h @ p["whh_t"] + p["b_lstm"]
        i_g = jax.nn.sigmoid(gates[:, :D])
        f_g = jax.nn.sigmoid(gates[:, D:2 * D])
        g_g = jnp.tanh(gates[:, 2 * D:3 * D])
        o_g = jax.nn.sigmoid(gates[:, 3 * D:])
        c = f_g * c + i_g * g_g
        h = o_g * jnp.tanh(c)
        e = jnp.einsum('bnd,bd->bn', x, h)
        a = jax.nn.softmax(e, axis=1)
        r = jnp.einsum('bn,bnd->bd', a, x)
        qs = jnp.concatenate([h, r], axis=-1)

    def bnorm(hh, g, b):
        mu = hh.mean(0, keepdims=True)
        var = ((hh - mu) ** 2).mean(0, keepdims=True)
        return g * (hh - mu) / jnp.sqrt(var + 1e-5) + b

    h1 = bnorm(jax.nn.relu(qs @ p["w1"] + p["b1"]), p["g1"], p["be1"])
    h2 = bnorm(jax.nn.relu(h1 @ p["w2"] + p["b2"]), p["g2"], p["be2"])
    return jax.nn.relu(h2 @ p["w3"] + p["b3"])


if __name__ == "__main__":
    key = jax.random.PRNGKey(0)
    # small shapes: batch B=2, set size N=8, in_size D=16, hidden H=32, out O=8
    B, N, D, H, O = 2, 8, 16, 32, 8
    ks = jax.random.split(key, 8)
    s = 0.1  # deterministic synthetic init scale (xavier-like small weights)

    params = {
        # LSTM(input=2D, hidden=D), weights pre-transposed to (in, 4D)
        "wih_t": s * jax.random.normal(ks[0], (2 * D, 4 * D), jnp.float32),
        "whh_t": s * jax.random.normal(ks[1], (D, 4 * D), jnp.float32),
        "b_lstm": s * jax.random.normal(ks[2], (1, 4 * D), jnp.float32),
        # MLP: FCLayer biases are zero-initialized in the PyTorch module,
        # BatchNorm gamma=1, beta=0
        "w1": s * jax.random.normal(ks[3], (2 * D, H), jnp.float32),
        "b1": jnp.zeros((1, H), jnp.float32),
        "g1": jnp.ones((1, H), jnp.float32),
        "be1": jnp.zeros((1, H), jnp.float32),
        "w2": s * jax.random.normal(ks[4], (H, H), jnp.float32),
        "b2": jnp.zeros((1, H), jnp.float32),
        "g2": jnp.ones((1, H), jnp.float32),
        "be2": jnp.zeros((1, H), jnp.float32),
        "w3": s * jax.random.normal(ks[5], (H, O), jnp.float32),
        "b3": jnp.zeros((1, O), jnp.float32),
    }
    prep = prepare_params(params)   # W_hh fold + output-lane padding, done once

    # 1) Fused single-tile path (grid of 1), f32 matmuls — exact numeric check.
    x = jax.random.normal(ks[6], (B, N, D), jnp.float32)
    out = jax.block_until_ready(s2s_readout(x, prep, matmul_dtype=jnp.float32))
    ref = jax.block_until_ready(s2s_readout_reference(x, params))
    np.testing.assert_allclose(np.asarray(out), np.asarray(ref), rtol=2e-2, atol=2e-2)

    # 2) Batch-tiled path (grid > 1, batch padding) + separate full-batch BN kernel.
    B2 = 20
    x2 = jax.random.normal(ks[7], (B2, N, D), jnp.float32)
    out2 = jax.block_until_ready(s2s_readout(x2, prep, tile_b=8,
                                             matmul_dtype=jnp.float32))
    ref2 = jax.block_until_ready(s2s_readout_reference(x2, params))
    np.testing.assert_allclose(np.asarray(out2), np.asarray(ref2), rtol=2e-2, atol=2e-2)

    # 3) Production default (bf16 Set2Set matmul inputs) — sanity check only;
    #    bf16 drift over the LSTM recurrence should be validated per target N.
    out_bf = jax.block_until_ready(s2s_readout(x, prep))
    assert out_bf.shape == ref.shape and bool(jnp.all(jnp.isfinite(out_bf)))

    print("KERNEL_OK")
</pallas_src>

<mosaic_0001>
module attributes {stable_mosaic.version = 11 : i64} {
  func.func @fused_s2s_mlp_kernel(%arg0: memref<2x8x16xf32, #tpu.memory_space<vmem>>, %arg1: memref<16x64xf32, #tpu.memory_space<vmem>>, %arg2: memref<16x64xf32, #tpu.memory_space<vmem>>, %arg3: memref<1x64xf32, #tpu.memory_space<vmem>>, %arg4: memref<32x32xf32, #tpu.memory_space<vmem>>, %arg5: memref<1x32xf32, #tpu.memory_space<vmem>>, %arg6: memref<1x32xf32, #tpu.memory_space<vmem>>, %arg7: memref<1x32xf32, #tpu.memory_space<vmem>>, %arg8: memref<32x32xf32, #tpu.memory_space<vmem>>, %arg9: memref<1x32xf32, #tpu.memory_space<vmem>>, %arg10: memref<1x32xf32, #tpu.memory_space<vmem>>, %arg11: memref<1x32xf32, #tpu.memory_space<vmem>>, %arg12: memref<32x128xf32, #tpu.memory_space<vmem>>, %arg13: memref<1x128xf32, #tpu.memory_space<vmem>>, %arg14: memref<2x128xf32, #tpu.memory_space<vmem>>) attributes {dimension_semantics = [], scalar_prefetch = 0 : i64, scratch_operands = 0 : i64, tpu.core_type = #tpu.core_type<tc>} {
    %c0 = arith.constant 0 : index
    %c0_0 = arith.constant 0 : index
    %c0_1 = arith.constant 0 : index
    %0 = vector.load %arg0[%c0, %c0_0, %c0_1] : memref<2x8x16xf32, #tpu.memory_space<vmem>>, vector<2x8x16xf32>
    %c0_2 = arith.constant 0 : index
    %c0_3 = arith.constant 0 : index
    %1 = vector.load %arg1[%c0_2, %c0_3] : memref<16x64xf32, #tpu.memory_space<vmem>>, vector<16x64xf32>
    %c0_4 = arith.constant 0 : index
    %c0_5 = arith.constant 0 : index
    %2 = vector.load %arg2[%c0_4, %c0_5] : memref<16x64xf32, #tpu.memory_space<vmem>>, vector<16x64xf32>
    %c0_6 = arith.constant 0 : index
    %c0_7 = arith.constant 0 : index
    %3 = vector.load %arg3[%c0_6, %c0_7] : memref<1x64xf32, #tpu.memory_space<vmem>>, vector<1x64xf32>
    %4 = vector.shape_cast %3 : vector<1x64xf32> to vector<1x64xf32>
    %5 = vector.broadcast %4 : vector<1x64xf32> to vector<2x64xf32>
    %cst = arith.constant 0.000000e+00 : f32
    %6 = vector.broadcast %cst : f32 to vector<2x16xf32>
    %cst_8 = arith.constant 0.000000e+00 : f32
    %7 = vector.broadcast %cst_8 : f32 to vector<2x16xf32>
    %cst_9 = arith.constant 0.000000e+00 : f32
    %8 = vector.broadcast %cst_9 : f32 to vector<2x16xf32>
    %c0_i32 = arith.constant 0 : i32
    %cst_10 = arith.constant dense<0.000000e+00> : vector<2x64xf32>
    %9 = tpu.matmul %6, %1, %cst_10 {dimension_numbers = #tpu.dot_dimension_numbers<[1], [0], [0], [1], [0, 0, 1, 1], [], []>} : vector<2x16xf32>, vector<16x64xf32>, vector<2x64xf32> -> vector<2x64xf32>
    %cst_11 = arith.constant dense<0.000000e+00> : vector<2x64xf32>
    %10 = tpu.matmul %8, %2, %cst_11 {dimension_numbers = #tpu.dot_dimension_numbers<[1], [0], [0], [1], [0, 0, 1, 1], [], []>} : vector<2x16xf32>, vector<16x64xf32>, vector<2x64xf32> -> vector<2x64xf32>
    %11 = arith.addf %9, %10 : vector<2x64xf32>
    %12 = arith.addf %11, %5 : vector<2x64xf32>
    %13 = vector.extract_strided_slice %12 {offsets = [0, 0], sizes = [2, 16], strides = [1, 1]} : vector<2x64xf32> to vector<2x16xf32>
    %14 = arith.negf %13 : vector<2x16xf32>
    %15 = math.exp %14 : vector<2x16xf32>
    %cst_12 = arith.constant 1.000000e+00 : f32
    %16 = vector.broadcast %cst_12 : f32 to vector<2x16xf32>
    %17 = arith.addf %16, %15 : vector<2x16xf32>
    %18 = arith.divf %16, %17 : vector<2x16xf32>
    %19 = vector.extract_strided_slice %12 {offsets = [0, 16], sizes = [2, 16], strides = [1, 1]} : vector<2x64xf32> to vector<2x16xf32>
    %20 = arith.negf %19 : vector<2x16xf32>
    %21 = math.exp %20 : vector<2x16xf32>
    %cst_13 = arith.constant 1.000000e+00 : f32
    %22 = vector.broadcast %cst_13 : f32 to vector<2x16xf32>
    %23 = arith.addf %22, %21 : vector<2x16xf32>
    %24 = arith.divf %22, %23 : vector<2x16xf32>
    %25 = vector.extract_strided_slice %12 {offsets = [0, 32], sizes = [2, 16], strides = [1, 1]} : vector<2x64xf32> to vector<2x16xf32>
    %26 = math.tanh %25 : vector<2x16xf32>
    %27 = vector.extract_strided_slice %12 {offsets = [0, 48], sizes = [2, 16], strides = [1, 1]} : vector<2x64xf32> to vector<2x16xf32>
    %28 = arith.negf %27 : vector<2x16xf32>
    %29 = math.exp %28 : vector<2x16xf32>
    %cst_14 = arith.constant 1.000000e+00 : f32
    %30 = vector.broadcast %cst_14 : f32 to vector<2x16xf32>
    %31 = arith.addf %30, %29 : vector<2x16xf32>
    %32 = arith.divf %30, %31 : vector<2x16xf32>
    %33 = arith.mulf %24, %7 : vector<2x16xf32>
    %34 = arith.mulf %18, %26 : vector<2x16xf32>
    %35 = arith.addf %33, %34 : vector<2x16xf32>
    %36 = math.tanh %35 : vector<2x16xf32>
    %37 = arith.mulf %32, %36 : vector<2x16xf32>
    %38 = vector.shape_cast %37 : vector<2x16xf32> to vector<2x1x16xf32>
    %39 = vector.broadcast %38 : vector<2x1x16xf32> to vector<2x8x16xf32>
    %40 = arith.mulf %0, %39 : vector<2x8x16xf32>
    %cst_15 = arith.constant dense<0.000000e+00> : vector<2x8xf32>
    %41 = vector.multi_reduction <add>, %40, %cst_15 [2] : vector<2x8x16xf32> to vector<2x8xf32>
    %cst_16 = arith.constant dense<0xFF800000> : vector<2xf32>
    %42 = vector.multi_reduction <maximumf>, %41, %cst_16 [1] : vector<2x8xf32> to vector<2xf32>
    %43 = vector.shape_cast %42 : vector<2xf32> to vector<2x1xf32>
    %44 = vector.broadcast %43 : vector<2x1xf32> to vector<2x8xf32>
    %45 = arith.subf %41, %44 : vector<2x8xf32>
    %46 = math.exp %45 : vector<2x8xf32>
    %cst_17 = arith.constant dense<0.000000e+00> : vector<2xf32>
    %47 = vector.multi_reduction <add>, %46, %cst_17 [1] : vector<2x8xf32> to vector<2xf32>
    %48 = vector.shape_cast %47 : vector<2xf32> to vector<2x1xf32>
    %49 = vector.shape_cast %46 : vector<2x8xf32> to vector<2x8x1xf32>
    %50 = vector.broadcast %49 : vector<2x8x1xf32> to vector<2x8x16xf32>
    %51 = arith.mulf %50, %0 : vector<2x8x16xf32>
    %cst_18 = arith.constant dense<0.000000e+00> : vector<2x16xf32>
    %52 = vector.multi_reduction <add>, %51, %cst_18 [1] : vector<2x8x16xf32> to vector<2x16xf32>
    %53 = tpu.reciprocal %48 {approx = true} : vector<2x1xf32> -> vector<2x1xf32>
    %54 = vector.broadcast %53 : vector<2x1xf32> to vector<2x16xf32>
    %55 = arith.mulf %52, %54 : vector<2x16xf32>
    %c1_i32 = arith.constant 1 : i32
    %cst_19 = arith.constant dense<0.000000e+00> : vector<2x64xf32>
    %56 = tpu.matmul %37, %1, %cst_19 {dimension_numbers = #tpu.dot_dimension_numbers<[1], [0], [0], [1], [0, 0, 1, 1], [], []>} : vector<2x16xf32>, vector<16x64xf32>, vector<2x64xf32> -> vector<2x64xf32>
    %cst_20 = arith.constant dense<0.000000e+00> : vector<2x64xf32>
    %57 = tpu.matmul %55, %2, %cst_20 {dimension_numbers = #tpu.dot_dimension_numbers<[1], [0], [0], [1], [0, 0, 1, 1], [], []>} : vector<2x16xf32>, vector<16x64xf32>, vector<2x64xf32> -> vector<2x64xf32>
    %58 = arith.addf %56, %57 : vector<2x64xf32>
    %59 = arith.addf %58, %5 : vector<2x64xf32>
    %60 = vector.extract_strided_slice %59 {offsets = [0, 0], sizes = [2, 16], strides = [1, 1]} : vector<2x64xf32> to vector<2x16xf32>
    %61 = arith.negf %60 : vector<2x16xf32>
    %62 = math.exp %61 : vector<2x16xf32>
    %cst_21 = arith.constant 1.000000e+00 : f32
    %63 = vector.broadcast %cst_21 : f32 to vector<2x16xf32>
    %64 = arith.addf %63, %62 : vector<2x16xf32>
    %65 = arith.divf %63, %64 : vector<2x16xf32>
    %66 = vector.extract_strided_slice %59 {offsets = [0, 16], sizes = [2, 16], strides = [1, 1]} : vector<2x64xf32> to vector<2x16xf32>
    %67 = arith.negf %66 : vector<2x16xf32>
    %68 = math.exp %67 : vector<2x16xf32>
    %cst_22 = arith.constant 1.000000e+00 : f32
    %69 = vector.broadcast %cst_22 : f32 to vector<2x16xf32>
    %70 = arith.addf %69, %68 : vector<2x16xf32>
    %71 = arith.divf %69, %70 : vector<2x16xf32>
    %72 = vector.extract_strided_slice %59 {offsets = [0, 32], sizes = [2, 16], strides = [1, 1]} : vector<2x64xf32> to vector<2x16xf32>
    %73 = math.tanh %72 : vector<2x16xf32>
    %74 = vector.extract_strided_slice %59 {offsets = [0, 48], sizes = [2, 16], strides = [1, 1]} : vector<2x64xf32> to vector<2x16xf32>
    %75 = arith.negf %74 : vector<2x16xf32>
    %76 = math.exp %75 : vector<2x16xf32>
    %cst_23 = arith.constant 1.000000e+00 : f32
    %77 = vector.broadcast %cst_23 : f32 to vector<2x16xf32>
    %78 = arith.addf %77, %76 : vector<2x16xf32>
    %79 = arith.divf %77, %78 : vector<2x16xf32>
    %80 = arith.mulf %71, %35 : vector<2x16xf32>
    %81 = arith.mulf %65, %73 : vector<2x16xf32>
    %82 = arith.addf %80, %81 : vector<2x16xf32>
    %83 = math.tanh %82 : vector<2x16xf32>
    %84 = arith.mulf %79, %83 : vector<2x16xf32>
    %85 = vector.shape_cast %84 : vector<2x16xf32> to vector<2x1x16xf32>
    %86 = vector.broadcast %85 : vector<2x1x16xf32> to vector<2x8x16xf32>
    %87 = arith.mulf %0, %86 : vector<2x8x16xf32>
    %cst_24 = arith.constant dense<0.000000e+00> : vector<2x8xf32>
    %88 = vector.multi_reduction <add>, %87, %cst_24 [2] : vector<2x8x16xf32> to vector<2x8xf32>
    %cst_25 = arith.constant dense<0xFF800000> : vector<2xf32>
    %89 = vector.multi_reduction <maximumf>, %88, %cst_25 [1] : vector<2x8xf32> to vector<2xf32>
    %90 = vector.shape_cast %89 : vector<2xf32> to vector<2x1xf32>
    %91 = vector.broadcast %90 : vector<2x1xf32> to vector<2x8xf32>
    %92 = arith.subf %88, %91 : vector<2x8xf32>
    %93 = math.exp %92 : vector<2x8xf32>
    %cst_26 = arith.constant dense<0.000000e+00> : vector<2xf32>
    %94 = vector.multi_reduction <add>, %93, %cst_26 [1] : vector<2x8xf32> to vector<2xf32>
    %95 = vector.shape_cast %94 : vector<2xf32> to vector<2x1xf32>
    %96 = vector.shape_cast %93 : vector<2x8xf32> to vector<2x8x1xf32>
    %97 = vector.broadcast %96 : vector<2x8x1xf32> to vector<2x8x16xf32>
    %98 = arith.mulf %97, %0 : vector<2x8x16xf32>
    %cst_27 = arith.constant dense<0.000000e+00> : vector<2x16xf32>
    %99 = vector.multi_reduction <add>, %98, %cst_27 [1] : vector<2x8x16xf32> to vector<2x16xf32>
    %100 = tpu.reciprocal %95 {approx = true} : vector<2x1xf32> -> vector<2x1xf32>
    %101 = vector.broadcast %100 : vector<2x1xf32> to vector<2x16xf32>
    %102 = arith.mulf %99, %101 : vector<2x16xf32>
    %c2_i32 = arith.constant 2 : i32
    %cst_28 = arith.constant dense<0.000000e+00> : vector<2x64xf32>
    %103 = tpu.matmul %84, %1, %cst_28 {dimension_numbers = #tpu.dot_dimension_numbers<[1], [0], [0], [1], [0, 0, 1, 1], [], []>} : vector<2x16xf32>, vector<16x64xf32>, vector<2x64xf32> -> vector<2x64xf32>
    %cst_29 = arith.constant dense<0.000000e+00> : vector<2x64xf32>
    %104 = tpu.matmul %102, %2, %cst_29 {dimension_numbers = #tpu.dot_dimension_numbers<[1], [0], [0], [1], [0, 0, 1, 1], [], []>} : vector<2x16xf32>, vector<16x64xf32>, vector<2x64xf32> -> vector<2x64xf32>
    %105 = arith.addf %103, %104 : vector<2x64xf32>
    %106 = arith.addf %105, %5 : vector<2x64xf32>
    %107 = vector.extract_strided_slice %106 {offsets = [0, 0], sizes = [2, 16], strides = [1, 1]} : vector<2x64xf32> to vector<2x16xf32>
    %108 = arith.negf %107 : vector<2x16xf32>
    %109 = math.exp %108 : vector<2x16xf32>
    %cst_30 = arith.constant 1.000000e+00 : f32
    %110 = vector.broadcast %cst_30 : f32 to vector<2x16xf32>
    %111 = arith.addf %110, %109 : vector<2x16xf32>
    %112 = arith.divf %110, %111 : vector<2x16xf32>
    %113 = vector.extract_strided_slice %106 {offsets = [0, 16], sizes = [2, 16], strides = [1, 1]} : vector<2x64xf32> to vector<2x16xf32>
    %114 = arith.negf %113 : vector<2x16xf32>
    %115 = math.exp %114 : vector<2x16xf32>
    %cst_31 = arith.constant 1.000000e+00 : f32
    %116 = vector.broadcast %cst_31 : f32 to vector<2x16xf32>
    %117 = arith.addf %116, %115 : vector<2x16xf32>
    %118 = arith.divf %116, %117 : vector<2x16xf32>
    %119 = vector.extract_strided_slice %106 {offsets = [0, 32], sizes = [2, 16], strides = [1, 1]} : vector<2x64xf32> to vector<2x16xf32>
    %120 = math.tanh %119 : vector<2x16xf32>
    %121 = vector.extract_strided_slice %106 {offsets = [0, 48], sizes = [2, 16], strides = [1, 1]} : vector<2x64xf32> to vector<2x16xf32>
    %122 = arith.negf %121 : vector<2x16xf32>
    %123 = math.exp %122 : vector<2x16xf32>
    %cst_32 = arith.constant 1.000000e+00 : f32
    %124 = vector.broadcast %cst_32 : f32 to vector<2x16xf32>
    %125 = arith.addf %124, %123 : vector<2x16xf32>
    %126 = arith.divf %124, %125 : vector<2x16xf32>
    %127 = arith.mulf %118, %82 : vector<2x16xf32>
    %128 = arith.mulf %112, %120 : vector<2x16xf32>
    %129 = arith.addf %127, %128 : vector<2x16xf32>
    %130 = math.tanh %129 : vector<2x16xf32>
    %131 = arith.mulf %126, %130 : vector<2x16xf32>
    %132 = vector.shape_cast %131 : vector<2x16xf32> to vector<2x1x16xf32>
    %133 = vector.broadcast %132 : vector<2x1x16xf32> to vector<2x8x16xf32>
    %134 = arith.mulf %0, %133 : vector<2x8x16xf32>
    %cst_33 = arith.constant dense<0.000000e+00> : vector<2x8xf32>
    %135 = vector.multi_reduction <add>, %134, %cst_33 [2] : vector<2x8x16xf32> to vector<2x8xf32>
    %cst_34 = arith.constant dense<0xFF800000> : vector<2xf32>
    %136 = vector.multi_reduction <maximumf>, %135, %cst_34 [1] : vector<2x8xf32> to vector<2xf32>
    %137 = vector.shape_cast %136 : vector<2xf32> to vector<2x1xf32>
    %138 = vector.broadcast %137 : vector<2x1xf32> to vector<2x8xf32>
    %139 = arith.subf %135, %138 : vector<2x8xf32>
    %140 = math.exp %139 : vector<2x8xf32>
    %cst_35 = arith.constant dense<0.000000e+00> : vector<2xf32>
    %141 = vector.multi_reduction <add>, %140, %cst_35 [1] : vector<2x8xf32> to vector<2xf32>
    %142 = vector.shape_cast %141 : vector<2xf32> to vector<2x1xf32>
    %143 = vector.shape_cast %140 : vector<2x8xf32> to vector<2x8x1xf32>
    %144 = vector.broadcast %143 : vector<2x8x1xf32> to vector<2x8x16xf32>
    %145 = arith.mulf %144, %0 : vector<2x8x16xf32>
    %cst_36 = arith.constant dense<0.000000e+00> : vector<2x16xf32>
    %146 = vector.multi_reduction <add>, %145, %cst_36 [1] : vector<2x8x16xf32> to vector<2x16xf32>
    %147 = tpu.reciprocal %142 {approx = true} : vector<2x1xf32> -> vector<2x1xf32>
    %148 = vector.broadcast %147 : vector<2x1xf32> to vector<2x16xf32>
    %149 = arith.mulf %146, %148 : vector<2x16xf32>
    %c3_i32 = arith.constant 3 : i32
    %cst_37 = arith.constant dense<0.000000e+00> : vector<2x64xf32>
    %150 = tpu.matmul %131, %1, %cst_37 {dimension_numbers = #tpu.dot_dimension_numbers<[1], [0], [0], [1], [0, 0, 1, 1], [], []>} : vector<2x16xf32>, vector<16x64xf32>, vector<2x64xf32> -> vector<2x64xf32>
    %cst_38 = arith.constant dense<0.000000e+00> : vector<2x64xf32>
    %151 = tpu.matmul %149, %2, %cst_38 {dimension_numbers = #tpu.dot_dimension_numbers<[1], [0], [0], [1], [0, 0, 1, 1], [], []>} : vector<2x16xf32>, vector<16x64xf32>, vector<2x64xf32> -> vector<2x64xf32>
    %152 = arith.addf %150, %151 : vector<2x64xf32>
    %153 = arith.addf %152, %5 : vector<2x64xf32>
    %154 = vector.extract_strided_slice %153 {offsets = [0, 0], sizes = [2, 16], strides = [1, 1]} : vector<2x64xf32> to vector<2x16xf32>
    %155 = arith.negf %154 : vector<2x16xf32>
    %156 = math.exp %155 : vector<2x16xf32>
    %cst_39 = arith.constant 1.000000e+00 : f32
    %157 = vector.broadcast %cst_39 : f32 to vector<2x16xf32>
    %158 = arith.addf %157, %156 : vector<2x16xf32>
    %159 = arith.divf %157, %158 : vector<2x16xf32>
    %160 = vector.extract_strided_slice %153 {offsets = [0, 16], sizes = [2, 16], strides = [1, 1]} : vector<2x64xf32> to vector<2x16xf32>
    %161 = arith.negf %160 : vector<2x16xf32>
    %162 = math.exp %161 : vector<2x16xf32>
    %cst_40 = arith.constant 1.000000e+00 : f32
    %163 = vector.broadcast %cst_40 : f32 to vector<2x16xf32>
    %164 = arith.addf %163, %162 : vector<2x16xf32>
    %165 = arith.divf %163, %164 : vector<2x16xf32>
    %166 = vector.extract_strided_slice %153 {offsets = [0, 32], sizes = [2, 16], strides = [1, 1]} : vector<2x64xf32> to vector<2x16xf32>
    %167 = math.tanh %166 : vector<2x16xf32>
    %168 = vector.extract_strided_slice %153 {offsets = [0, 48], sizes = [2, 16], strides = [1, 1]} : vector<2x64xf32> to vector<2x16xf32>
    %169 = arith.negf %168 : vector<2x16xf32>
    %170 = math.exp %169 : vector<2x16xf32>
    %cst_41 = arith.constant 1.000000e+00 : f32
    %171 = vector.broadcast %cst_41 : f32 to vector<2x16xf32>
    %172 = arith.addf %171, %170 : vector<2x16xf32>
    %173 = arith.divf %171, %172 : vector<2x16xf32>
    %174 = arith.mulf %165, %129 : vector<2x16xf32>
    %175 = arith.mulf %159, %167 : vector<2x16xf32>
    %176 = arith.addf %174, %175 : vector<2x16xf32>
    %177 = math.tanh %176 : vector<2x16xf32>
    %178 = arith.mulf %173, %177 : vector<2x16xf32>
    %179 = vector.shape_cast %178 : vector<2x16xf32> to vector<2x1x16xf32>
    %180 = vector.broadcast %179 : vector<2x1x16xf32> to vector<2x8x16xf32>
    %181 = arith.mulf %0, %180 : vector<2x8x16xf32>
    %cst_42 = arith.constant dense<0.000000e+00> : vector<2x8xf32>
    %182 = vector.multi_reduction <add>, %181, %cst_42 [2] : vector<2x8x16xf32> to vector<2x8xf32>
    %cst_43 = arith.constant dense<0xFF800000> : vector<2xf32>
    %183 = vector.multi_reduction <maximumf>, %182, %cst_43 [1] : vector<2x8xf32> to vector<2xf32>
    %184 = vector.shape_cast %183 : vector<2xf32> to vector<2x1xf32>
    %185 = vector.broadcast %184 : vector<2x1xf32> to vector<2x8xf32>
    %186 = arith.subf %182, %185 : vector<2x8xf32>
    %187 = math.exp %186 : vector<2x8xf32>
    %cst_44 = arith.constant dense<0.000000e+00> : vector<2xf32>
    %188 = vector.multi_reduction <add>, %187, %cst_44 [1] : vector<2x8xf32> to vector<2xf32>
    %189 = vector.shape_cast %188 : vector<2xf32> to vector<2x1xf32>
    %190 = vector.shape_cast %187 : vector<2x8xf32> to vector<2x8x1xf32>
    %191 = vector.broadcast %190 : vector<2x8x1xf32> to vector<2x8x16xf32>
    %192 = arith.mulf %191, %0 : vector<2x8x16xf32>
    %cst_45 = arith.constant dense<0.000000e+00> : vector<2x16xf32>
    %193 = vector.multi_reduction <add>, %192, %cst_45 [1] : vector<2x8x16xf32> to vector<2x16xf32>
    %194 = tpu.reciprocal %189 {approx = true} : vector<2x1xf32> -> vector<2x1xf32>
    %195 = vector.broadcast %194 : vector<2x1xf32> to vector<2x16xf32>
    %196 = arith.mulf %193, %195 : vector<2x16xf32>
    %c4_i32 = arith.constant 4 : i32
    %cst_46 = arith.constant dense<0.000000e+00> : vector<2x64xf32>
    %197 = tpu.matmul %178, %1, %cst_46 {dimension_numbers = #tpu.dot_dimension_numbers<[1], [0], [0], [1], [0, 0, 1, 1], [], []>} : vector<2x16xf32>, vector<16x64xf32>, vector<2x64xf32> -> vector<2x64xf32>
    %cst_47 = arith.constant dense<0.000000e+00> : vector<2x64xf32>
    %198 = tpu.matmul %196, %2, %cst_47 {dimension_numbers = #tpu.dot_dimension_numbers<[1], [0], [0], [1], [0, 0, 1, 1], [], []>} : vector<2x16xf32>, vector<16x64xf32>, vector<2x64xf32> -> vector<2x64xf32>
    %199 = arith.addf %197, %198 : vector<2x64xf32>
    %200 = arith.addf %199, %5 : vector<2x64xf32>
    %201 = vector.extract_strided_slice %200 {offsets = [0, 0], sizes = [2, 16], strides = [1, 1]} : vector<2x64xf32> to vector<2x16xf32>
    %202 = arith.negf %201 : vector<2x16xf32>
    %203 = math.exp %202 : vector<2x16xf32>
    %cst_48 = arith.constant 1.000000e+00 : f32
    %204 = vector.broadcast %cst_48 : f32 to vector<2x16xf32>
    %205 = arith.addf %204, %203 : vector<2x16xf32>
    %206 = arith.divf %204, %205 : vector<2x16xf32>
    %207 = vector.extract_strided_slice %200 {offsets = [0, 16], sizes = [2, 16], strides = [1, 1]} : vector<2x64xf32> to vector<2x16xf32>
    %208 = arith.negf %207 : vector<2x16xf32>
    %209 = math.exp %208 : vector<2x16xf32>
    %cst_49 = arith.constant 1.000000e+00 : f32
    %210 = vector.broadcast %cst_49 : f32 to vector<2x16xf32>
    %211 = arith.addf %210, %209 : vector<2x16xf32>
    %212 = arith.divf %210, %211 : vector<2x16xf32>
    %213 = vector.extract_strided_slice %200 {offsets = [0, 32], sizes = [2, 16], strides = [1, 1]} : vector<2x64xf32> to vector<2x16xf32>
    %214 = math.tanh %213 : vector<2x16xf32>
    %215 = vector.extract_strided_slice %200 {offsets = [0, 48], sizes = [2, 16], strides = [1, 1]} : vector<2x64xf32> to vector<2x16xf32>
    %216 = arith.negf %215 : vector<2x16xf32>
    %217 = math.exp %216 : vector<2x16xf32>
    %cst_50 = arith.constant 1.000000e+00 : f32
    %218 = vector.broadcast %cst_50 : f32 to vector<2x16xf32>
    %219 = arith.addf %218, %217 : vector<2x16xf32>
    %220 = arith.divf %218, %219 : vector<2x16xf32>
    %221 = arith.mulf %212, %176 : vector<2x16xf32>
    %222 = arith.mulf %206, %214 : vector<2x16xf32>
    %223 = arith.addf %221, %222 : vector<2x16xf32>
    %224 = math.tanh %223 : vector<2x16xf32>
    %225 = arith.mulf %220, %224 : vector<2x16xf32>
    %226 = vector.shape_cast %225 : vector<2x16xf32> to vector<2x1x16xf32>
    %227 = vector.broadcast %226 : vector<2x1x16xf32> to vector<2x8x16xf32>
    %228 = arith.mulf %0, %227 : vector<2x8x16xf32>
    %cst_51 = arith.constant dense<0.000000e+00> : vector<2x8xf32>
    %229 = vector.multi_reduction <add>, %228, %cst_51 [2] : vector<2x8x16xf32> to vector<2x8xf32>
    %cst_52 = arith.constant dense<0xFF800000> : vector<2xf32>
    %230 = vector.multi_reduction <maximumf>, %229, %cst_52 [1] : vector<2x8xf32> to vector<2xf32>
    %231 = vector.shape_cast %230 : vector<2xf32> to vector<2x1xf32>
    %232 = vector.broadcast %231 : vector<2x1xf32> to vector<2x8xf32>
    %233 = arith.subf %229, %232 : vector<2x8xf32>
    %234 = math.exp %233 : vector<2x8xf32>
    %cst_53 = arith.constant dense<0.000000e+00> : vector<2xf32>
    %235 = vector.multi_reduction <add>, %234, %cst_53 [1] : vector<2x8xf32> to vector<2xf32>
    %236 = vector.shape_cast %235 : vector<2xf32> to vector<2x1xf32>
    %237 = vector.shape_cast %234 : vector<2x8xf32> to vector<2x8x1xf32>
    %238 = vector.broadcast %237 : vector<2x8x1xf32> to vector<2x8x16xf32>
    %239 = arith.mulf %238, %0 : vector<2x8x16xf32>
    %cst_54 = arith.constant dense<0.000000e+00> : vector<2x16xf32>
    %240 = vector.multi_reduction <add>, %239, %cst_54 [1] : vector<2x8x16xf32> to vector<2x16xf32>
    %241 = tpu.reciprocal %236 {approx = true} : vector<2x1xf32> -> vector<2x1xf32>
    %242 = vector.broadcast %241 : vector<2x1xf32> to vector<2x16xf32>
    %243 = arith.mulf %240, %242 : vector<2x16xf32>
    %c5_i32 = arith.constant 5 : i32
    %cst_55 = arith.constant dense<0.000000e+00> : vector<2x64xf32>
    %244 = tpu.matmul %225, %1, %cst_55 {dimension_numbers = #tpu.dot_dimension_numbers<[1], [0], [0], [1], [0, 0, 1, 1], [], []>} : vector<2x16xf32>, vector<16x64xf32>, vector<2x64xf32> -> vector<2x64xf32>
    %cst_56 = arith.constant dense<0.000000e+00> : vector<2x64xf32>
    %245 = tpu.matmul %243, %2, %cst_56 {dimension_numbers = #tpu.dot_dimension_numbers<[1], [0], [0], [1], [0, 0, 1, 1], [], []>} : vector<2x16xf32>, vector<16x64xf32>, vector<2x64xf32> -> vector<2x64xf32>
    %246 = arith.addf %244, %245 : vector<2x64xf32>
    %247 = arith.addf %246, %5 : vector<2x64xf32>
    %248 = vector.extract_strided_slice %247 {offsets = [0, 0], sizes = [2, 16], strides = [1, 1]} : vector<2x64xf32> to vector<2x16xf32>
    %249 = arith.negf %248 : vector<2x16xf32>
    %250 = math.exp %249 : vector<2x16xf32>
    %cst_57 = arith.constant 1.000000e+00 : f32
    %251 = vector.broadcast %cst_57 : f32 to vector<2x16xf32>
    %252 = arith.addf %251, %250 : vector<2x16xf32>
    %253 = arith.divf %251, %252 : vector<2x16xf32>
    %254 = vector.extract_strided_slice %247 {offsets = [0, 16], sizes = [2, 16], strides = [1, 1]} : vector<2x64xf32> to vector<2x16xf32>
    %255 = arith.negf %254 : vector<2x16xf32>
    %256 = math.exp %255 : vector<2x16xf32>
    %cst_58 = arith.constant 1.000000e+00 : f32
    %257 = vector.broadcast %cst_58 : f32 to vector<2x16xf32>
    %258 = arith.addf %257, %256 : vector<2x16xf32>
    %259 = arith.divf %257, %258 : vector<2x16xf32>
    %260 = vector.extract_strided_slice %247 {offsets = [0, 32], sizes = [2, 16], strides = [1, 1]} : vector<2x64xf32> to vector<2x16xf32>
    %261 = math.tanh %260 : vector<2x16xf32>
    %262 = vector.extract_strided_slice %247 {offsets = [0, 48], sizes = [2, 16], strides = [1, 1]} : vector<2x64xf32> to vector<2x16xf32>
    %263 = arith.negf %262 : vector<2x16xf32>
    %264 = math.exp %263 : vector<2x16xf32>
    %cst_59 = arith.constant 1.000000e+00 : f32
    %265 = vector.broadcast %cst_59 : f32 to vector<2x16xf32>
    %266 = arith.addf %265, %264 : vector<2x16xf32>
    %267 = arith.divf %265, %266 : vector<2x16xf32>
    %268 = arith.mulf %259, %223 : vector<2x16xf32>
    %269 = arith.mulf %253, %261 : vector<2x16xf32>
    %270 = arith.addf %268, %269 : vector<2x16xf32>
    %271 = math.tanh %270 : vector<2x16xf32>
    %272 = arith.mulf %267, %271 : vector<2x16xf32>
    %273 = vector.shape_cast %272 : vector<2x16xf32> to vector<2x1x16xf32>
    %274 = vector.broadcast %273 : vector<2x1x16xf32> to vector<2x8x16xf32>
    %275 = arith.mulf %0, %274 : vector<2x8x16xf32>
    %cst_60 = arith.constant dense<0.000000e+00> : vector<2x8xf32>
    %276 = vector.multi_reduction <add>, %275, %cst_60 [2] : vector<2x8x16xf32> to vector<2x8xf32>
    %cst_61 = arith.constant dense<0xFF800000> : vector<2xf32>
    %277 = vector.multi_reduction <maximumf>, %276, %cst_61 [1] : vector<2x8xf32> to vector<2xf32>
    %278 = vector.shape_cast %277 : vector<2xf32> to vector<2x1xf32>
    %279 = vector.broadcast %278 : vector<2x1xf32> to vector<2x8xf32>
    %280 = arith.subf %276, %279 : vector<2x8xf32>
    %281 = math.exp %280 : vector<2x8xf32>
    %cst_62 = arith.constant dense<0.000000e+00> : vector<2xf32>
    %282 = vector.multi_reduction <add>, %281, %cst_62 [1] : vector<2x8xf32> to vector<2xf32>
    %283 = vector.shape_cast %282 : vector<2xf32> to vector<2x1xf32>
    %284 = vector.shape_cast %281 : vector<2x8xf32> to vector<2x8x1xf32>
    %285 = vector.broadcast %284 : vector<2x8x1xf32> to vector<2x8x16xf32>
    %286 = arith.mulf %285, %0 : vector<2x8x16xf32>
    %cst_63 = arith.constant dense<0.000000e+00> : vector<2x16xf32>
    %287 = vector.multi_reduction <add>, %286, %cst_63 [1] : vector<2x8x16xf32> to vector<2x16xf32>
    %288 = tpu.reciprocal %283 {approx = true} : vector<2x1xf32> -> vector<2x1xf32>
    %289 = vector.broadcast %288 : vector<2x1xf32> to vector<2x16xf32>
    %290 = arith.mulf %287, %289 : vector<2x16xf32>
    %c6_i32 = arith.constant 6 : i32
    %cst_64 = arith.constant dense<0.000000e+00> : vector<2x64xf32>
    %291 = tpu.matmul %272, %1, %cst_64 {dimension_numbers = #tpu.dot_dimension_numbers<[1], [0], [0], [1], [0, 0, 1, 1], [], []>} : vector<2x16xf32>, vector<16x64xf32>, vector<2x64xf32> -> vector<2x64xf32>
    %cst_65 = arith.constant dense<0.000000e+00> : vector<2x64xf32>
    %292 = tpu.matmul %290, %2, %cst_65 {dimension_numbers = #tpu.dot_dimension_numbers<[1], [0], [0], [1], [0, 0, 1, 1], [], []>} : vector<2x16xf32>, vector<16x64xf32>, vector<2x64xf32> -> vector<2x64xf32>
    %293 = arith.addf %291, %292 : vector<2x64xf32>
    %294 = arith.addf %293, %5 : vector<2x64xf32>
    %295 = vector.extract_strided_slice %294 {offsets = [0, 0], sizes = [2, 16], strides = [1, 1]} : vector<2x64xf32> to vector<2x16xf32>
    %296 = arith.negf %295 : vector<2x16xf32>
    %297 = math.exp %296 : vector<2x16xf32>
    %cst_66 = arith.constant 1.000000e+00 : f32
    %298 = vector.broadcast %cst_66 : f32 to vector<2x16xf32>
    %299 = arith.addf %298, %297 : vector<2x16xf32>
    %300 = arith.divf %298, %299 : vector<2x16xf32>
    %301 = vector.extract_strided_slice %294 {offsets = [0, 16], sizes = [2, 16], strides = [1, 1]} : vector<2x64xf32> to vector<2x16xf32>
    %302 = arith.negf %301 : vector<2x16xf32>
    %303 = math.exp %302 : vector<2x16xf32>
    %cst_67 = arith.constant 1.000000e+00 : f32
    %304 = vector.broadcast %cst_67 : f32 to vector<2x16xf32>
    %305 = arith.addf %304, %303 : vector<2x16xf32>
    %306 = arith.divf %304, %305 : vector<2x16xf32>
    %307 = vector.extract_strided_slice %294 {offsets = [0, 32], sizes = [2, 16], strides = [1, 1]} : vector<2x64xf32> to vector<2x16xf32>
    %308 = math.tanh %307 : vector<2x16xf32>
    %309 = vector.extract_strided_slice %294 {offsets = [0, 48], sizes = [2, 16], strides = [1, 1]} : vector<2x64xf32> to vector<2x16xf32>
    %310 = arith.negf %309 : vector<2x16xf32>
    %311 = math.exp %310 : vector<2x16xf32>
    %cst_68 = arith.constant 1.000000e+00 : f32
    %312 = vector.broadcast %cst_68 : f32 to vector<2x16xf32>
    %313 = arith.addf %312, %311 : vector<2x16xf32>
    %314 = arith.divf %312, %313 : vector<2x16xf32>
    %315 = arith.mulf %306, %270 : vector<2x16xf32>
    %316 = arith.mulf %300, %308 : vector<2x16xf32>
    %317 = arith.addf %315, %316 : vector<2x16xf32>
    %318 = math.tanh %317 : vector<2x16xf32>
    %319 = arith.mulf %314, %318 : vector<2x16xf32>
    %320 = vector.shape_cast %319 : vector<2x16xf32> to vector<2x1x16xf32>
    %321 = vector.broadcast %320 : vector<2x1x16xf32> to vector<2x8x16xf32>
    %322 = arith.mulf %0, %321 : vector<2x8x16xf32>
    %cst_69 = arith.constant dense<0.000000e+00> : vector<2x8xf32>
    %323 = vector.multi_reduction <add>, %322, %cst_69 [2] : vector<2x8x16xf32> to vector<2x8xf32>
    %cst_70 = arith.constant dense<0xFF800000> : vector<2xf32>
    %324 = vector.multi_reduction <maximumf>, %323, %cst_70 [1] : vector<2x8xf32> to vector<2xf32>
    %325 = vector.shape_cast %324 : vector<2xf32> to vector<2x1xf32>
    %326 = vector.broadcast %325 : vector<2x1xf32> to vector<2x8xf32>
    %327 = arith.subf %323, %326 : vector<2x8xf32>
    %328 = math.exp %327 : vector<2x8xf32>
    %cst_71 = arith.constant dense<0.000000e+00> : vector<2xf32>
    %329 = vector.multi_reduction <add>, %328, %cst_71 [1] : vector<2x8xf32> to vector<2xf32>
    %330 = vector.shape_cast %329 : vector<2xf32> to vector<2x1xf32>
    %331 = vector.shape_cast %328 : vector<2x8xf32> to vector<2x8x1xf32>
    %332 = vector.broadcast %331 : vector<2x8x1xf32> to vector<2x8x16xf32>
    %333 = arith.mulf %332, %0 : vector<2x8x16xf32>
    %cst_72 = arith.constant dense<0.000000e+00> : vector<2x16xf32>
    %334 = vector.multi_reduction <add>, %333, %cst_72 [1] : vector<2x8x16xf32> to vector<2x16xf32>
    %335 = tpu.reciprocal %330 {approx = true} : vector<2x1xf32> -> vector<2x1xf32>
    %336 = vector.broadcast %335 : vector<2x1xf32> to vector<2x16xf32>
    %337 = arith.mulf %334, %336 : vector<2x16xf32>
    %c7_i32 = arith.constant 7 : i32
    %cst_73 = arith.constant dense<0.000000e+00> : vector<2x64xf32>
    %338 = tpu.matmul %319, %1, %cst_73 {dimension_numbers = #tpu.dot_dimension_numbers<[1], [0], [0], [1], [0, 0, 1, 1], [], []>} : vector<2x16xf32>, vector<16x64xf32>, vector<2x64xf32> -> vector<2x64xf32>
    %cst_74 = arith.constant dense<0.000000e+00> : vector<2x64xf32>
    %339 = tpu.matmul %337, %2, %cst_74 {dimension_numbers = #tpu.dot_dimension_numbers<[1], [0], [0], [1], [0, 0, 1, 1], [], []>} : vector<2x16xf32>, vector<16x64xf32>, vector<2x64xf32> -> vector<2x64xf32>
    %340 = arith.addf %338, %339 : vector<2x64xf32>
    %341 = arith.addf %340, %5 : vector<2x64xf32>
    %342 = vector.extract_strided_slice %341 {offsets = [0, 0], sizes = [2, 16], strides = [1, 1]} : vector<2x64xf32> to vector<2x16xf32>
    %343 = arith.negf %342 : vector<2x16xf32>
    %344 = math.exp %343 : vector<2x16xf32>
    %cst_75 = arith.constant 1.000000e+00 : f32
    %345 = vector.broadcast %cst_75 : f32 to vector<2x16xf32>
    %346 = arith.addf %345, %344 : vector<2x16xf32>
    %347 = arith.divf %345, %346 : vector<2x16xf32>
    %348 = vector.extract_strided_slice %341 {offsets = [0, 16], sizes = [2, 16], strides = [1, 1]} : vector<2x64xf32> to vector<2x16xf32>
    %349 = arith.negf %348 : vector<2x16xf32>
    %350 = math.exp %349 : vector<2x16xf32>
    %cst_76 = arith.constant 1.000000e+00 : f32
    %351 = vector.broadcast %cst_76 : f32 to vector<2x16xf32>
    %352 = arith.addf %351, %350 : vector<2x16xf32>
    %353 = arith.divf %351, %352 : vector<2x16xf32>
    %354 = vector.extract_strided_slice %341 {offsets = [0, 32], sizes = [2, 16], strides = [1, 1]} : vector<2x64xf32> to vector<2x16xf32>
    %355 = math.tanh %354 : vector<2x16xf32>
    %356 = vector.extract_strided_slice %341 {offsets = [0, 48], sizes = [2, 16], strides = [1, 1]} : vector<2x64xf32> to vector<2x16xf32>
    %357 = arith.negf %356 : vector<2x16xf32>
    %358 = math.exp %357 : vector<2x16xf32>
    %cst_77 = arith.constant 1.000000e+00 : f32
    %359 = vector.broadcast %cst_77 : f32 to vector<2x16xf32>
    %360 = arith.addf %359, %358 : vector<2x16xf32>
    %361 = arith.divf %359, %360 : vector<2x16xf32>
    %362 = arith.mulf %353, %317 : vector<2x16xf32>
    %363 = arith.mulf %347, %355 : vector<2x16xf32>
    %364 = arith.addf %362, %363 : vector<2x16xf32>
    %365 = math.tanh %364 : vector<2x16xf32>
    %366 = arith.mulf %361, %365 : vector<2x16xf32>
    %367 = vector.shape_cast %366 : vector<2x16xf32> to vector<2x1x16xf32>
    %368 = vector.broadcast %367 : vector<2x1x16xf32> to vector<2x8x16xf32>
    %369 = arith.mulf %0, %368 : vector<2x8x16xf32>
    %cst_78 = arith.constant dense<0.000000e+00> : vector<2x8xf32>
    %370 = vector.multi_reduction <add>, %369, %cst_78 [2] : vector<2x8x16xf32> to vector<2x8xf32>
    %cst_79 = arith.constant dense<0xFF800000> : vector<2xf32>
    %371 = vector.multi_reduction <maximumf>, %370, %cst_79 [1] : vector<2x8xf32> to vector<2xf32>
    %372 = vector.shape_cast %371 : vector<2xf32> to vector<2x1xf32>
    %373 = vector.broadcast %372 : vector<2x1xf32> to vector<2x8xf32>
    %374 = arith.subf %370, %373 : vector<2x8xf32>
    %375 = math.exp %374 : vector<2x8xf32>
    %cst_80 = arith.constant dense<0.000000e+00> : vector<2xf32>
    %376 = vector.multi_reduction <add>, %375, %cst_80 [1] : vector<2x8xf32> to vector<2xf32>
    %377 = vector.shape_cast %376 : vector<2xf32> to vector<2x1xf32>
    %378 = vector.shape_cast %375 : vector<2x8xf32> to vector<2x8x1xf32>
    %379 = vector.broadcast %378 : vector<2x8x1xf32> to vector<2x8x16xf32>
    %380 = arith.mulf %379, %0 : vector<2x8x16xf32>
    %cst_81 = arith.constant dense<0.000000e+00> : vector<2x16xf32>
    %381 = vector.multi_reduction <add>, %380, %cst_81 [1] : vector<2x8x16xf32> to vector<2x16xf32>
    %382 = tpu.reciprocal %377 {approx = true} : vector<2x1xf32> -> vector<2x1xf32>
    %383 = vector.broadcast %382 : vector<2x1xf32> to vector<2x16xf32>
    %384 = arith.mulf %381, %383 : vector<2x16xf32>
    %385 = tpu.concatenate %366, %384 in 1 : vector<2x16xf32>, vector<2x16xf32> -> vector<2x32xf32>
    %c0_82 = arith.constant 0 : index
    %c0_83 = arith.constant 0 : index
    %386 = vector.load %arg4[%c0_82, %c0_83] : memref<32x32xf32, #tpu.memory_space<vmem>>, vector<32x32xf32>
    %c0_84 = arith.constant 0 : index
    %c0_85 = arith.constant 0 : index
    %387 = vector.load %arg5[%c0_84, %c0_85] : memref<1x32xf32, #tpu.memory_space<vmem>>, vector<1x32xf32>
    %c0_86 = arith.constant 0 : index
    %c0_87 = arith.constant 0 : index
    %388 = vector.load %arg6[%c0_86, %c0_87] : memref<1x32xf32, #tpu.memory_space<vmem>>, vector<1x32xf32>
    %c0_88 = arith.constant 0 : index
    %c0_89 = arith.constant 0 : index
    %389 = vector.load %arg7[%c0_88, %c0_89] : memref<1x32xf32, #tpu.memory_space<vmem>>, vector<1x32xf32>
    %c0_90 = arith.constant 0 : index
    %c0_91 = arith.constant 0 : index
    %390 = vector.load %arg8[%c0_90, %c0_91] : memref<32x32xf32, #tpu.memory_space<vmem>>, vector<32x32xf32>
    %c0_92 = arith.constant 0 : index
    %c0_93 = arith.constant 0 : index
    %391 = vector.load %arg9[%c0_92, %c0_93] : memref<1x32xf32, #tpu.memory_space<vmem>>, vector<1x32xf32>
    %c0_94 = arith.constant 0 : index
    %c0_95 = arith.constant 0 : index
    %392 = vector.load %arg10[%c0_94, %c0_95] : memref<1x32xf32, #tpu.memory_space<vmem>>, vector<1x32xf32>
    %c0_96 = arith.constant 0 : index
    %c0_97 = arith.constant 0 : index
    %393 = vector.load %arg11[%c0_96, %c0_97] : memref<1x32xf32, #tpu.memory_space<vmem>>, vector<1x32xf32>
    %c0_98 = arith.constant 0 : index
    %c0_99 = arith.constant 0 : index
    %394 = vector.load %arg12[%c0_98, %c0_99] : memref<32x128xf32, #tpu.memory_space<vmem>>, vector<32x128xf32>
    %c0_100 = arith.constant 0 : index
    %c0_101 = arith.constant 0 : index
    %395 = vector.load %arg13[%c0_100, %c0_101] : memref<1x128xf32, #tpu.memory_space<vmem>>, vector<1x128xf32>
    %cst_102 = arith.constant dense<0.000000e+00> : vector<2x32xf32>
    %396 = tpu.matmul %385, %386, %cst_102 {dimension_numbers = #tpu.dot_dimension_numbers<[1], [0], [0], [1], [0, 0, 1, 1], [], []>} : vector<2x32xf32>, vector<32x32xf32>, vector<2x32xf32> -> vector<2x32xf32>
    %397 = vector.broadcast %387 : vector<1x32xf32> to vector<2x32xf32>
    %398 = arith.addf %396, %397 : vector<2x32xf32>
    %cst_103 = arith.constant 0.000000e+00 : f32
    %399 = vector.broadcast %cst_103 : f32 to vector<2x32xf32>
    %400 = arith.maximumf %398, %399 : vector<2x32xf32>
    %cst_104 = arith.constant dense<0.000000e+00> : vector<32xf32>
    %401 = vector.multi_reduction <add>, %400, %cst_104 [0] : vector<2x32xf32> to vector<32xf32>
    %402 = vector.shape_cast %401 : vector<32xf32> to vector<1x32xf32>
    %cst_105 = arith.constant 2.000000e+00 : f32
    %403 = vector.broadcast %cst_105 : f32 to vector<1x32xf32>
    %404 = arith.divf %402, %403 : vector<1x32xf32>
    %405 = arith.mulf %400, %400 : vector<2x32xf32>
    %cst_106 = arith.constant dense<0.000000e+00> : vector<32xf32>
    %406 = vector.multi_reduction <add>, %405, %cst_106 [0] : vector<2x32xf32> to vector<32xf32>
    %407 = vector.shape_cast %406 : vector<32xf32> to vector<1x32xf32>
    %cst_107 = arith.constant 2.000000e+00 : f32
    %408 = vector.broadcast %cst_107 : f32 to vector<1x32xf32>
    %409 = arith.divf %407, %408 : vector<1x32xf32>
    %410 = arith.mulf %404, %404 : vector<1x32xf32>
    %411 = arith.subf %409, %410 : vector<1x32xf32>
    %cst_108 = arith.constant 9.99999974E-6 : f32
    %412 = vector.broadcast %cst_108 : f32 to vector<1x32xf32>
    %413 = arith.addf %411, %412 : vector<1x32xf32>
    %414 = math.rsqrt %413 : vector<1x32xf32>
    %415 = arith.mulf %388, %414 : vector<1x32xf32>
    %416 = vector.broadcast %415 : vector<1x32xf32> to vector<2x32xf32>
    %417 = arith.mulf %400, %416 : vector<2x32xf32>
    %418 = arith.mulf %404, %415 : vector<1x32xf32>
    %419 = arith.subf %389, %418 : vector<1x32xf32>
    %420 = vector.broadcast %419 : vector<1x32xf32> to vector<2x32xf32>
    %421 = arith.addf %417, %420 : vector<2x32xf32>
    %cst_109 = arith.constant dense<0.000000e+00> : vector<2x32xf32>
    %422 = tpu.matmul %421, %390, %cst_109 {dimension_numbers = #tpu.dot_dimension_numbers<[1], [0], [0], [1], [0, 0, 1, 1], [], []>} : vector<2x32xf32>, vector<32x32xf32>, vector<2x32xf32> -> vector<2x32xf32>
    %423 = vector.broadcast %391 : vector<1x32xf32> to vector<2x32xf32>
    %424 = arith.addf %422, %423 : vector<2x32xf32>
    %cst_110 = arith.constant 0.000000e+00 : f32
    %425 = vector.broadcast %cst_110 : f32 to vector<2x32xf32>
    %426 = arith.maximumf %424, %425 : vector<2x32xf32>
    %cst_111 = arith.constant dense<0.000000e+00> : vector<32xf32>
    %427 = vector.multi_reduction <add>, %426, %cst_111 [0] : vector<2x32xf32> to vector<32xf32>
    %428 = vector.shape_cast %427 : vector<32xf32> to vector<1x32xf32>
    %cst_112 = arith.constant 2.000000e+00 : f32
    %429 = vector.broadcast %cst_112 : f32 to vector<1x32xf32>
    %430 = arith.divf %428, %429 : vector<1x32xf32>
    %431 = arith.mulf %426, %426 : vector<2x32xf32>
    %cst_113 = arith.constant dense<0.000000e+00> : vector<32xf32>
    %432 = vector.multi_reduction <add>, %431, %cst_113 [0] : vector<2x32xf32> to vector<32xf32>
    %433 = vector.shape_cast %432 : vector<32xf32> to vector<1x32xf32>
    %cst_114 = arith.constant 2.000000e+00 : f32
    %434 = vector.broadcast %cst_114 : f32 to vector<1x32xf32>
    %435 = arith.divf %433, %434 : vector<1x32xf32>
    %436 = arith.mulf %430, %430 : vector<1x32xf32>
    %437 = arith.subf %435, %436 : vector<1x32xf32>
    %cst_115 = arith.constant 9.99999974E-6 : f32
    %438 = vector.broadcast %cst_115 : f32 to vector<1x32xf32>
    %439 = arith.addf %437, %438 : vector<1x32xf32>
    %440 = math.rsqrt %439 : vector<1x32xf32>
    %441 = arith.mulf %392, %440 : vector<1x32xf32>
    %442 = vector.broadcast %441 : vector<1x32xf32> to vector<2x32xf32>
    %443 = arith.mulf %426, %442 : vector<2x32xf32>
    %444 = arith.mulf %430, %441 : vector<1x32xf32>
    %445 = arith.subf %393, %444 : vector<1x32xf32>
    %446 = vector.broadcast %445 : vector<1x32xf32> to vector<2x32xf32>
    %447 = arith.addf %443, %446 : vector<2x32xf32>
    %cst_116 = arith.constant dense<0.000000e+00> : vector<2x128xf32>
    %448 = tpu.matmul %447, %394, %cst_116 {dimension_numbers = #tpu.dot_dimension_numbers<[1], [0], [0], [1], [0, 0, 1, 1], [], []>} : vector<2x32xf32>, vector<32x128xf32>, vector<2x128xf32> -> vector<2x128xf32>
    %449 = vector.broadcast %395 : vector<1x128xf32> to vector<2x128xf32>
    %450 = arith.addf %448, %449 : vector<2x128xf32>
    %cst_117 = arith.constant 0.000000e+00 : f32
    %451 = vector.broadcast %cst_117 : f32 to vector<2x128xf32>
    %452 = arith.maximumf %450, %451 : vector<2x128xf32>
    %c0_118 = arith.constant 0 : index
    %c0_119 = arith.constant 0 : index
    %453 = vector.load %arg14[%c0_118, %c0_119] : memref<2x128xf32, #tpu.memory_space<vmem>>, vector<2x128xf32>
    tpu.vector_store %arg14[%c0_118, %c0_119], %452 {strides = array<i32>} : memref<2x128xf32, #tpu.memory_space<vmem>>, vector<2x128xf32>,
    return
  }
}

</mosaic_0001>

<bundles_post_ra>
// kernel: tpu_custom_call.1
= control target key start
LH: loop header
LB: loop body
LE: loop exit
PB: predicated region body
PF: predicated region fallthrough
CT: control target
= control target key end

     0   :  { %19 = vsyncpa [#allocation3], 0  ;;  %s2508_s0 = inlined_call_operand.hbm [shape: f32[2,8,16], index: 0, kind: input, shape index: {}]   ;;  %s2509_s1 = inlined_call_operand.hbm [shape: f32[16,64], index: 1, kind: input, shape index: {}]   ;;  %s2510_s2 = inlined_call_operand.hbm [shape: f32[16,64], index: 2, kind: input, shape index: {}]   ;;  %s2511_s3 = inlined_call_operand.vmem [shape: f32[1,64], index: 3, kind: input, shape index: {}]   ;;  %s2512_s4 = inlined_call_operand.hbm [shape: f32[32,32], index: 4, kind: input, shape index: {}]   ;;  %s2513_s5 = inlined_call_operand.vmem [shape: f32[1,32], index: 5, kind: input, shape index: {}]   ;;  %s2514_s6 = inlined_call_operand.vmem [shape: f32[1,32], index: 6, kind: input, shape index: {}]   ;;  %s2515_s7 = inlined_call_operand.vmem [shape: f32[1,32], index: 7, kind: input, shape index: {}]   ;;  %s2516_s8 = inlined_call_operand.hbm [shape: f32[32,32], index: 8, kind: input, shape index: {}]   ;;  %s2517_s9 = inlined_call_operand.vmem [shape: f32[1,32], index: 9, kind: input, shape index: {}]   ;;  %s2518_s10 = inlined_call_operand.vmem [shape: f32[1,32], index: 10, kind: input, shape index: {}]   ;;  %s2519_s11 = inlined_call_operand.vmem [shape: f32[1,32], index: 11, kind: input, shape index: {}]   ;;  %s2520_s12 = inlined_call_operand.hbm [shape: f32[32,128], index: 12, kind: input, shape index: {}]   ;;  %s2521_s13 = inlined_call_operand.vmem [shape: f32[1,128], index: 13, kind: input, shape index: {}]   ;;  %s2522_s14 = inlined_call_operand.hbm [shape: f32[2,128], index: 14, kind: output, shape index: {}]  }
   0x1   :  { %20 = vsyncpa [#allocation6], 0 }
   0x2   :  { %21 = vsyncpa [#allocation9], 0 }
   0x3   :  { %22 = vsyncpa [#allocation12], 0 }
   0x4   :  { %23 = vsyncpa [#allocation4], 0  ;;  %s41_s15 = sshll.u32 %s2509_s1, 4  ;;  %s2048_s16 = smov [#allocation5]   ;;  %s42_s15 = int_to_ptr.hbm [resolvable:$true] %s41_s15 }
   0x5   :  { %s43_s17 = sshll.u32 %s2048_s16, 4  ;;  %s69_s20 = sshll.u32 %s2512_s4, 4  ;;  %s44_s17 = int_to_ptr.vmem [resolvable:$true] %s43_s17  ;;  %s70_s20 = int_to_ptr.hbm [resolvable:$true] %s69_s20 }
   0x6   :  { %s2049_s21 = smov 128   ;;  %s2050_s22 = smov 8  }
   0x7   :  { %49 = dma.hbm_to_vmem [thread:$0]  %s42_s15, 256, %s44_s17, [#allocation6], %s2049_s21, %s2049_s21, %s2050_s22  }
   0x8   :  { %s2051_s23 = smov [#allocation8]   ;;  %s28_s1 = sshll.u32 %s2508_s0, 4  ;;  %s29_s1 = int_to_ptr.hbm [resolvable:$true] %s28_s1 }
   0x9   :  { %s71_s24 = sshll.u32 %s2051_s23, 4  ;;  %s54_s28 = sshll.u32 %s2510_s2, 4  ;;  %s72_s24 = int_to_ptr.vmem [resolvable:$true] %s71_s24  ;;  %s55_s28 = int_to_ptr.hbm [resolvable:$true] %s54_s28 }
   0xa   :  { %77 = dma.hbm_to_vmem [thread:$0]  %s70_s20, 512, %s72_s24, [#allocation9], %s2049_s21, %s2049_s21, %s2050_s22  }
   0xb   :  { %s2052_s29 = smov [#allocation2]   ;;  %s2053_s15 = smov [#allocation7]  }
   0xc   :  { %s30_s30 = sshll.u32 %s2052_s29, 4  ;;  %s56_s0 = sshll.u32 %s2053_s15, 4  ;;  %s31_s30 = int_to_ptr.vmem [resolvable:$true] %s30_s30  ;;  %s57_s0 = int_to_ptr.vmem [resolvable:$true] %s56_s0 }
   0xd   :  { %36 = dma.hbm_to_vmem [thread:$0]  %s29_s1, 256, %s31_s30, [#allocation3], %s2049_s21, %s2049_s21, %s2050_s22  }
   0xe   :  { %s88_s18 = sshll.u32 %s2516_s8, 4  ;;  %s107_s20 = sshll.u32 %s2520_s12, 4  ;;  %s89_s18 = int_to_ptr.hbm [resolvable:$true] %s88_s18  ;;  %s108_s20 = int_to_ptr.hbm [resolvable:$true] %s107_s20 }
   0xf   :  { %62 = dma.hbm_to_vmem [thread:$0]  %s55_s28, 256, %s57_s0, [#allocation6], %s2049_s21, %s2049_s21, %s2050_s22  }
  0x10   :  { %s2054_s23 = smov [#allocation10]   ;;  %s2055_s25 = smov [#allocation11]  }
  0x11   :  { %s90_s24 = sshll.u32 %s2054_s23, 4  ;;  %s109_s8 = sshll.u32 %s2055_s25, 4  ;;  %s91_s24 = int_to_ptr.vmem [resolvable:$true] %s90_s24  ;;  %s110_s8 = int_to_ptr.vmem [resolvable:$true] %s109_s8 }
  0x12   :  { %96 = dma.hbm_to_vmem [thread:$0]  %s89_s18, 512, %s91_s24, [#allocation9], %s2049_s21, %s2049_s21, %s2050_s22  }
  0x13   :  { %115 = dma.hbm_to_vmem [thread:$0]  %s108_s20, 512, %s110_s8, [#allocation12], %s2049_s21, %s2049_s21, %s2050_s22  }
  0x14   :  { %2038 = dma.done.wait [#allocation3], 256  }
  0x15   :  { %2039 = vsyncadd [#allocation3], 4294967040 }
  0x16   :  { %2040 = dma.done.wait [#allocation6], 512  }
  0x17   :  { %2041 = vsyncadd [#allocation6], 4294966784 }
  0x18   :  { %2042 = dma.done.wait [#allocation9], 1024  }
  0x19   :  { %2043 = vsyncadd [#allocation9], 4294966272 }
  0x1a   :  { %2044 = dma.done.wait [#allocation12], 512  }
  0x1b   :  { %2045 = vsyncadd [#allocation12], 4294966784  ;;  %v2175_v0 = vld [vmem:[#allocation7 + $0x8] sm:$0xff]  ;;  %v2177_v1 = vld [vmem:[#allocation5 + $0x8] sm:$0xff]  ;;  %v2056_v4 = vmov 0.0   ;;  %s2057_s22 = smov 96   ;;  %v254_v43 = vlaneseq }
  0x1c   :  { %v2179_v2 = vld [vmem:[#allocation7] sm:$0xff]  ;;  %170 = vmatpush.msra.mxu0 %v2175_v0  ;;  %190 = vmatpush.msra.mxu1 %v2177_v1  ;;  %v2183_v3 = vld [vmem:[#allocation5] sm:$0xff]  ;;  %s2058_s26 = smov 16   ;;  %s2059_s1 = smov 32   ;;  %v2217_v35 = vld [vmem:[#allocation2 + $0x8] sm:$0xff]  ;;  %vm152_vm4 = vcmask 130048  }
  0x1d   :  { %336 = vmatpush.msra.mxu2 %v2175_v0  ;;  %360 = vmatpush.msra.mxu3 %v2177_v1  ;;  %v2206_v5 = vld [vmem:[%s2511_s3] ss:$0 sm:$0xff]  ;;  %s2060_s4 = smov 80   ;;  %v2225_v44 = vand.u32 127, %v254_v43  ;;  %vm258_vm5 = vcmask 1041409   ;;  %vm261_vm6 = vcmask 58368  }
  0x1e   :  { %171 = vmatpush.msra.mxu0 %v2179_v2  ;;  %191 = vmatpush.msra.mxu1 %v2183_v3  ;;  %v2221_v39 = vld [vmem:[#allocation2] sm:$0xff]  ;;  %v2061_v51 = vmov 0   ;;  %s1688_s25 = sshll.u32 %s2522_s14, 4  ;;  %s1689_s25 = int_to_ptr.hbm [resolvable:$true] %s1688_s25 }
  0x1f   :  { %172 = vmatmul.f32.vlgmr.msra.gmra.mxu0 %v2056_v4  ;;  %192 = vmatmul.f32.vlgmr.msra.gmra.mxu1 %v2056_v4 }
  0x20   :  { %337 = vmatpush.msra.mxu2 %v2179_v2  ;;  %361 = vmatpush.msra.mxu3 %v2183_v3 }
  0x21   :  { %526 = vmatpush.msrb.mxu1 %v2177_v1  ;;  %502 = vmatpush.msrb.mxu0 %v2175_v0 }
  0x22   :  { %668 = vmatpush.msrb.mxu2 %v2175_v0  ;;  %692 = vmatpush.msrb.mxu3 %v2177_v1 }
  0x23   :  { %527 = vmatpush.msrb.mxu1 %v2183_v3  ;;  %503 = vmatpush.msrb.mxu0 %v2179_v2 }
  0x24   :  { %669 = vmatpush.msrb.mxu2 %v2179_v2  ;;  %693 = vmatpush.msrb.mxu3 %v2183_v3 }
  0x25   :  { %834 = vmatpush.msra.mxu0 %v2175_v0  ;;  %858 = vmatpush.msra.mxu1 %v2177_v1 }
  0x26   :  { %1743 = vset.pattern.permute.xlu0 %v2061_v51  ;;  %1742 = vset.pattern.permute.xlu2 %v2061_v51 }
  0x27   :  { %835 = vmatpush.msra.mxu0 %v2179_v2  ;;  %859 = vmatpush.msra.mxu1 %v2183_v3 }
  0x28   :  { %1744 = vset.pattern.permute.xlu1 %v2061_v51 }
  0x9c   :  { %v173_v6 = vpop.f32.mrf.mxu0  ;;  %v193_v7 = vpop.f32.mrf.mxu1 }
  0x9d   :  { %v194_v8 = vadd.f32 %v193_v7, %v173_v6 }
  0x9f   :  { %v196_v9 = vadd.f32 %v2206_v5, %v194_v8 }
  0xa1   :  { %1749 = vtanh.f32 %v196_v9  ;;  %v1701_v11 = vmul.f32 -1.442695, %v196_v9 }
  0xa3   :  { %1751 = vpow2.f32 %v1701_v11 }
  0xa7   :  { %v1750_v10 = vpop.eup %1749 }
  0xa8   :  { %219 = vrot.lane.b32.xlu0 %v1750_v10, %s2057_s22 }
  0xa9   :  { %v1752_v12 = vpop.eup %1751 }
  0xaa   :  { %v200_v13 = vadd.f32 1.0, %v1752_v12 }
  0xac   :  { %1753 = vrcp.f32 %v200_v13  ;;  %v212_v19 = vand.u32 2147483648, %v200_v13  ;;  %vm206_vm1 = vweird.f32 %v200_v13  ;;  %v210_v20 = vand.u32 2147483647, %v200_v13 }
  0xae   :  { %v213_v22 = vor.u32 1.1754944e-38, %v212_v19  ;;  %vm211_vm3 = vcmp.eq.f32.partialorder %v210_v20, 8.507059e+37 }
  0xb2   :  { %v1754_v14 = vpop.eup %1753 }
  0xb3   :  { %v202_v15 = vmul.f32 %v1754_v14, %v200_v13  ;;  %vm207_vm0 = vweird.f32 %v1754_v14 }
  0xb4   :  { %vm208_vm2 = vmor %vm206_vm1, %vm207_vm0 }
  0xb5   :  { %v203_v16 = vsub.f32 1.0, %v202_v15 }
  0xb7   :  { %v204_v17 = vmul.f32 %v1754_v14, %v203_v16 }
  0xb9   :  { %v205_v18 = vadd.f32 %v1754_v14, %v204_v17 }
  0xbb   :  { %v209_v21 = vsel %vm208_vm2, %v1754_v14, %v205_v18 }
  0xbc   :  { %v214_v24 = vsel %vm211_vm3, %v213_v22, %v209_v21 }
  0xbd   :  { %v217_v26 = vmul.f32 0.0, %v214_v24 }
 0x11a   :  { %v220_v23 = vpop.permute.xlu0 %219 }
 0x11b   :  { %v222_v25 = vmul.f32 %v220_v23, %v214_v24 }
 0x11d   :  { %224 = vrot.lane.b32.xlu0 %v222_v25, %s2058_s26 }
 0x18f   :  { %v225_v27 = vpop.permute.xlu0 %224 }
 0x190   :  { %v2211_v28 = vadd.f32 %v225_v27, %v217_v26 }
 0x192   :  { %1755 = vtanh.f32 %v2211_v28 }
 0x198   :  { %v1756_v29 = vpop.eup %1755 }
 0x199   :  { %230 = vrot.lane.b32.xlu1 %v1756_v29, %s2059_s1 }
 0x20b   :  { %v231_v30 = vpop.permute.xlu1 %230 }
 0x20c   :  { %v233_v31 = vmul.f32 %v231_v30, %v214_v24 }
 0x20e   :  { %v236_v32 = vperm.slane %v233_v31, 0  ;;  %v235_v33 = vrot.slane %v233_v31, 1 }
 0x210   :  { %238 = vrot.lane.b32.xlu1 %v236_v32, %s2060_s4  ;;  %v237_v34 = vperm.slane %v235_v33, 0 }
 0x212   :  { %240 = vrot.lane.b32.xlu2 %v237_v34, %s2060_s4 }
 0x26c   :  { %v241_v36 = vpop.permute.xlu2 %240 }
 0x26d   :  { %v245_v37 = vmul.f32 %v241_v36, %v2217_v35 }
 0x26f   :  { %v249_v38 = vsel %vm152_vm4, %v245_v37, 0.0 }
 0x270   :  { %250 = vadd.xlane.f32.xlu0 %v249_v38 }
 0x282   :  { %v239_v40 = vpop.permute.xlu1 %238 }
 0x283   :  { %v244_v41 = vmul.f32 %v239_v40, %v2221_v39 }
 0x285   :  { %v246_v42 = vsel %vm152_vm4, %v244_v41, 0.0 }
 0x286   :  { %247 = vadd.xlane.f32.xlu2 %v246_v42 }
 0x2e3   :  { %v251_v45 = vpop.xlane.xlu0 %250 }
 0x2e4   :  { %v257_v47 = vperm.slane %v251_v45, %v2225_v44 }
 0x2f9   :  { %v248_v46 = vpop.xlane.xlu2 %247 }
 0x2fa   :  { %v256_v48 = vperm.slane %v248_v46, %v2225_v44 }
 0x2fc   :  { %v259_v49 = vsel %vm258_vm5, %v257_v47, %v256_v48 }
 0x2fd   :  { %v262_v50 = vsel %vm261_vm6, %v259_v49, -inf }
 0x2fe   :  { %263 = vmax.xlane.f32.xlu1 %v262_v50 }
 0x371   :  { %v264_v52 = vpop.xlane.xlu1 %263 }
 0x372   :  { %v266_v53 = vperm.slane %v264_v52, 0  ;;  %v267_v54 = vperm.slane %v264_v52, 1 }
 0x374   :  { %v270_v55 = vsub.f32 %v248_v46, %v266_v53  ;;  %v271_v56 = vsub.f32 %v251_v45, %v267_v54 }
 0x376   :  { %v272_v57 = vmul.f32 1.442695, %v270_v55  ;;  %v274_v58 = vmul.f32 1.442695, %v271_v56 }
 0x378   :  { %1757 = vpow2.f32 %v272_v57 }
 0x379   :  { %1759 = vpow2.f32 %v274_v58 }
 0x37e   :  { %v1758_v59 = vpop.eup %1757 }
 0x37f   :  { %v1760_v60 = vpop.eup %1759  ;;  %279 = vperm.xlu2 %1742, %v1758_v59  }
 0x380   :  { %282 = vperm.xlu0 %1743, %v1760_v60  }
 0x3d9   :  { %v280_v61 = vpop.permute.xlu2 %279 }
 0x3da   :  { %v284_v63 = vperm.slane %v280_v61, %v2225_v44  ;;  %v293_v9 = vmul.f32 %v280_v61, %v2221_v39 }
 0x3dc   :  { %v295_v11 = vsel %vm152_vm4, %v293_v9, 0.0 }
 0x3dd   :  { %v296_v13 = vrot.slane %v295_v11, 4 }
 0x3df   :  { %v297_v15 = vadd.f32 %v296_v13, %v295_v11 }
 0x3e1   :  { %v298_v17 = vrot.slane %v297_v15, 2 }
 0x3e3   :  { %v299_v20 = vadd.f32 %v298_v17, %v297_v15 }
 0x3e5   :  { %v300_v22 = vrot.slane %v299_v20, 1 }
 0x3e7   :  { %v301_v26 = vadd.f32 %v300_v22, %v299_v20 }
 0x3f2   :  { %v283_v62 = vpop.permute.xlu0 %282 }
 0x3f3   :  { %v285_v4 = vperm.slane %v283_v62, %v2225_v44  ;;  %v294_v8 = vmul.f32 %v283_v62, %v2217_v35 }
 0x3f5   :  { %v286_v6 = vsel %vm258_vm5, %v285_v4, %v284_v63  ;;  %v302_v10 = vsel %vm152_vm4, %v294_v8, 0.0 }
 0x3f6   :  { %v288_v7 = vsel %vm261_vm6, %v286_v6, 0.0  ;;  %v303_v12 = vrot.slane %v302_v10, 4 }
 0x3f7   :  { %289 = vadd.xlane.f32.xlu1 %v288_v7 }
 0x3f8   :  { %v304_v14 = vadd.f32 %v303_v12, %v302_v10 }
 0x3fa   :  { %v305_v16 = vrot.slane %v304_v14, 2 }
 0x3fc   :  { %v306_v18 = vadd.f32 %v305_v16, %v304_v14 }
 0x3fe   :  { %v307_v21 = vrot.slane %v306_v18, 1 }
 0x400   :  { %v308_v25 = vadd.f32 %v307_v21, %v306_v18 }
 0x410   :  { %342 = vrot.lane.b32.xlu1 %v233_v31, %s2060_s4 }
 0x46a   :  { %v290_v19 = vpop.xlane.xlu1 %289 }
 0x46b   :  { %1761 = vrcp.f32 %v290_v19 }
 0x471   :  { %v1762_v23 = vpop.eup %1761 }
 0x472   :  { %v311_v24 = vrot.slane %v1762_v23, 1  ;;  %v314_v29 = vmul.f32 %v1762_v23, %v301_v26 }
 0x474   :  { %v315_v27 = vmul.f32 %v311_v24, %v308_v25 }
 0x476   :  { %v318_v30 = vrot.slane %v315_v27, 7 }
 0x478   :  { %v319_v31 = vsel %vm258_vm5, %v318_v30, %v314_v29 }
 0x479   :  { %1702 = vmatmul.msk.f32.vlgmr.msra.gmra.mxu2 %vm152_vm4, %v319_v31 }
 0x47a   :  { %1000 = vmatpush.msra.mxu2 %v2175_v0 }
 0x47c   :  { %1001 = vmatpush.msra.mxu2 %v2179_v2 }
 0x482   :  { %v343_v32 = vpop.permute.xlu1 %342 }
 0x483   :  { %1703 = vmatmul.msk.f32.vlgmr.msra.gmra.mxu3 %vm152_vm4, %v343_v32 }
 0x484   :  { %1024 = vmatpush.msra.mxu3 %v2177_v1 }
 0x486   :  { %1025 = vmatpush.msra.mxu3 %v2183_v3 }
 0x4fc   :  { %v339_v33 = vpop.f32.mrf.mxu2 }
 0x506   :  { %v363_v34 = vpop.f32.mrf.mxu3 }
 0x507   :  { %v364_v36 = vadd.f32 %v363_v34, %v339_v33 }
 0x509   :  { %v366_v37 = vadd.f32 %v2206_v5, %v364_v36 }
 0x50b   :  { %1763 = vtanh.f32 %v366_v37  ;;  %v1704_v40 = vmul.f32 -1.442695, %v366_v37 }
 0x50d   :  { %1765 = vpow2.f32 %v1704_v40 }
 0x511   :  { %v1764_v38 = vpop.eup %1763 }
 0x512   :  { %389 = vrot.lane.b32.xlu2 %v1764_v38, %s2057_s22 }
 0x513   :  { %v1766_v41 = vpop.eup %1765 }
 0x514   :  { %v370_v42 = vadd.f32 1.0, %v1766_v41 }
 0x516   :  { %1767 = vrcp.f32 %v370_v42  ;;  %v382_v49 = vand.u32 2147483648, %v370_v42  ;;  %vm376_vm8 = vweird.f32 %v370_v42  ;;  %v380_v50 = vand.u32 2147483647, %v370_v42 }
 0x518   :  { %v383_v52 = vor.u32 1.1754944e-38, %v382_v49  ;;  %vm381_vm10 = vcmp.eq.f32.partialorder %v380_v50, 8.507059e+37 }
 0x51c   :  { %v1768_v43 = vpop.eup %1767 }
 0x51d   :  { %v372_v45 = vmul.f32 %v1768_v43, %v370_v42  ;;  %vm377_vm7 = vweird.f32 %v1768_v43 }
 0x51e   :  { %vm378_vm9 = vmor %vm376_vm8, %vm377_vm7 }
 0x51f   :  { %v373_v46 = vsub.f32 1.0, %v372_v45 }
 0x521   :  { %v374_v47 = vmul.f32 %v1768_v43, %v373_v46 }
 0x523   :  { %v375_v48 = vadd.f32 %v1768_v43, %v374_v47 }
 0x525   :  { %v379_v51 = vsel %vm378_vm9, %v1768_v43, %v375_v48 }
 0x526   :  { %v384_v54 = vsel %vm381_vm10, %v383_v52, %v379_v51 }
 0x527   :  { %v387_v56 = vmul.f32 %v384_v54, %v2211_v28 }
 0x56c   :  { %v390_v53 = vpop.permute.xlu2 %389 }
 0x56d   :  { %v392_v55 = vmul.f32 %v390_v53, %v384_v54 }
 0x56f   :  { %394 = vrot.lane.b32.xlu2 %v392_v55, %s2058_s26 }
 0x5c9   :  { %v395_v57 = vpop.permute.xlu2 %394 }
 0x5ca   :  { %v2251_v58 = vadd.f32 %v395_v57, %v387_v56 }
 0x5cc   :  { %1769 = vtanh.f32 %v2251_v58 }
 0x5d2   :  { %v1770_v59 = vpop.eup %1769 }
 0x5d3   :  { %400 = vrot.lane.b32.xlu2 %v1770_v59, %s2059_s1 }
 0x62d   :  { %v401_v60 = vpop.permute.xlu2 %400 }
 0x62e   :  { %v403_v61 = vmul.f32 %v401_v60, %v384_v54 }
 0x630   :  { %v406_v62 = vperm.slane %v403_v61, 0  ;;  %v405_v63 = vrot.slane %v403_v61, 1 }
 0x632   :  { %408 = vrot.lane.b32.xlu1 %v406_v62, %s2060_s4  ;;  %v407_v4 = vperm.slane %v405_v63, 0 }
 0x634   :  { %410 = vrot.lane.b32.xlu2 %v407_v4, %s2060_s4 }
 0x68e   :  { %v411_v6 = vpop.permute.xlu2 %410 }
 0x68f   :  { %v415_v28 = vmul.f32 %v411_v6, %v2217_v35 }
 0x691   :  { %v419_v7 = vsel %vm152_vm4, %v415_v28, 0.0 }
 0x692   :  { %420 = vadd.xlane.f32.xlu1 %v419_v7 }
 0x6a4   :  { %v409_v8 = vpop.permute.xlu1 %408 }
 0x6a5   :  { %v414_v9 = vmul.f32 %v409_v8, %v2221_v39 }
 0x6a7   :  { %v416_v10 = vsel %vm152_vm4, %v414_v9, 0.0 }
 0x6a8   :  { %417 = vadd.xlane.f32.xlu0 %v416_v10 }
 0x705   :  { %v421_v11 = vpop.xlane.xlu1 %420 }
 0x706   :  { %v425_v13 = vperm.slane %v421_v11, %v2225_v44 }
 0x71b   :  { %v418_v12 = vpop.xlane.xlu0 %417 }
 0x71c   :  { %v424_v14 = vperm.slane %v418_v12, %v2225_v44 }
 0x71e   :  { %v426_v15 = vsel %vm258_vm5, %v425_v13, %v424_v14 }
 0x71f   :  { %v428_v16 = vsel %vm261_vm6, %v426_v15, -inf }
 0x720   :  { %429 = vmax.xlane.f32.xlu2 %v428_v16 }
 0x793   :  { %v430_v17 = vpop.xlane.xlu2 %429 }
 0x794   :  { %v432_v18 = vperm.slane %v430_v17, 0  ;;  %v433_v19 = vperm.slane %v430_v17, 1 }
 0x796   :  { %v436_v20 = vsub.f32 %v418_v12, %v432_v18  ;;  %v437_v21 = vsub.f32 %v421_v11, %v433_v19 }
 0x798   :  { %v438_v22 = vmul.f32 1.442695, %v436_v20  ;;  %v440_v23 = vmul.f32 1.442695, %v437_v21 }
 0x79a   :  { %1771 = vpow2.f32 %v438_v22 }
 0x79b   :  { %1773 = vpow2.f32 %v440_v23 }
 0x7a0   :  { %v1772_v24 = vpop.eup %1771 }
 0x7a1   :  { %v1774_v25 = vpop.eup %1773  ;;  %445 = vperm.xlu0 %1743, %v1772_v24  }
 0x7a2   :  { %448 = vperm.xlu1 %1744, %v1774_v25  }
 0x813   :  { %v446_v26 = vpop.permute.xlu0 %445 }
 0x814   :  { %v449_v27 = vpop.permute.xlu1 %448  ;;  %v450_v29 = vperm.slane %v446_v26, %v2225_v44  ;;  %v459_v34 = vmul.f32 %v446_v26, %v2221_v39 }
 0x815   :  { %v451_v30 = vperm.slane %v449_v27, %v2225_v44  ;;  %v460_v33 = vmul.f32 %v449_v27, %v2217_v35 }
 0x816   :  { %v461_v37 = vsel %vm152_vm4, %v459_v34, 0.0 }
 0x817   :  { %v452_v31 = vsel %vm258_vm5, %v451_v30, %v450_v29  ;;  %v468_v36 = vsel %vm152_vm4, %v460_v33, 0.0  ;;  %v462_v40 = vrot.slane %v461_v37, 4 }
 0x818   :  { %v454_v32 = vsel %vm261_vm6, %v452_v31, 0.0  ;;  %v469_v38 = vrot.slane %v468_v36, 4 }
 0x819   :  { %455 = vadd.xlane.f32.xlu2 %v454_v32  ;;  %v463_v42 = vadd.f32 %v462_v40, %v461_v37 }
 0x81a   :  { %v470_v41 = vadd.f32 %v469_v38, %v468_v36 }
 0x81b   :  { %v464_v45 = vrot.slane %v463_v42, 2 }
 0x81c   :  { %v471_v43 = vrot.slane %v470_v41, 2 }
 0x81d   :  { %v465_v48 = vadd.f32 %v464_v45, %v463_v42 }
 0x81e   :  { %v472_v46 = vadd.f32 %v471_v43, %v470_v41 }
 0x81f   :  { %v466_v50 = vrot.slane %v465_v48, 1 }
 0x820   :  { %v473_v49 = vrot.slane %v472_v46, 1 }
 0x821   :  { %v467_v55 = vadd.f32 %v466_v50, %v465_v48 }
 0x822   :  { %v474_v52 = vadd.f32 %v473_v49, %v472_v46 }
 0x831   :  { %508 = vrot.lane.b32.xlu2 %v403_v61, %s2060_s4 }
 0x88c   :  { %v456_v47 = vpop.xlane.xlu2 %455 }
 0x88d   :  { %1775 = vrcp.f32 %v456_v47 }
 0x893   :  { %v1776_v51 = vpop.eup %1775 }
 0x894   :  { %v477_v53 = vrot.slane %v1776_v51, 1  ;;  %v509_v54 = vpop.permute.xlu2 %508  ;;  %v480_v57 = vmul.f32 %v1776_v51, %v467_v55 }
 0x895   :  { %1706 = vmatmul.msk.f32.vlgmr.msrb.gmra.mxu1 %vm152_vm4, %v509_v54 }
 0x896   :  { %v481_v56 = vmul.f32 %v477_v53, %v474_v52  ;;  %1190 = vmatpush.msrb.mxu1 %v2177_v1 }
 0x898   :  { %v484_v59 = vrot.slane %v481_v56, 7  ;;  %1191 = vmatpush.msrb.mxu1 %v2183_v3 }
 0x89a   :  { %v485_v60 = vsel %vm258_vm5, %v484_v59, %v480_v57 }
 0x89b   :  { %1705 = vmatmul.msk.f32.vlgmr.msrb.gmra.mxu0 %vm152_vm4, %v485_v60 }
 0x89c   :  { %1166 = vmatpush.msrb.mxu0 %v2175_v0 }
 0x89e   :  { %1167 = vmatpush.msrb.mxu0 %v2179_v2 }
 0x912   :  { %v529_v61 = vpop.f32.mrf.mxu1 }
 0x918   :  { %v505_v62 = vpop.f32.mrf.mxu0 }
 0x919   :  { %v530_v63 = vadd.f32 %v529_v61, %v505_v62 }
 0x91b   :  { %v532_v4 = vadd.f32 %v2206_v5, %v530_v63 }
 0x91d   :  { %1777 = vtanh.f32 %v532_v4  ;;  %v1707_v28 = vmul.f32 -1.442695, %v532_v4 }
 0x91f   :  { %1779 = vpow2.f32 %v1707_v28 }
 0x923   :  { %v1778_v6 = vpop.eup %1777 }
 0x924   :  { %555 = vrot.lane.b32.xlu0 %v1778_v6, %s2057_s22 }
 0x925   :  { %v1780_v7 = vpop.eup %1779 }
 0x926   :  { %v536_v8 = vadd.f32 1.0, %v1780_v7 }
 0x928   :  { %1781 = vrcp.f32 %v536_v8  ;;  %v548_v14 = vand.u32 2147483648, %v536_v8  ;;  %vm542_vm12 = vweird.f32 %v536_v8  ;;  %v546_v15 = vand.u32 2147483647, %v536_v8 }
 0x92a   :  { %v549_v17 = vor.u32 1.1754944e-38, %v548_v14  ;;  %vm547_vm14 = vcmp.eq.f32.partialorder %v546_v15, 8.507059e+37 }
 0x92e   :  { %v1782_v9 = vpop.eup %1781 }
 0x92f   :  { %v538_v10 = vmul.f32 %v1782_v9, %v536_v8  ;;  %vm543_vm11 = vweird.f32 %v1782_v9 }
 0x930   :  { %vm544_vm13 = vmor %vm542_vm12, %vm543_vm11 }
 0x931   :  { %v539_v11 = vsub.f32 1.0, %v538_v10 }
 0x933   :  { %v540_v12 = vmul.f32 %v1782_v9, %v539_v11 }
 0x935   :  { %v541_v13 = vadd.f32 %v1782_v9, %v540_v12 }
 0x937   :  { %v545_v16 = vsel %vm544_vm13, %v1782_v9, %v541_v13 }
 0x938   :  { %v550_v19 = vsel %vm547_vm14, %v549_v17, %v545_v16 }
 0x939   :  { %v553_v21 = vmul.f32 %v550_v19, %v2251_v58 }
 0x996   :  { %v556_v18 = vpop.permute.xlu0 %555 }
 0x997   :  { %v558_v20 = vmul.f32 %v556_v18, %v550_v19 }
 0x999   :  { %560 = vrot.lane.b32.xlu1 %v558_v20, %s2058_s26 }
 0xa0b   :  { %v561_v22 = vpop.permute.xlu1 %560 }
 0xa0c   :  { %v2285_v23 = vadd.f32 %v561_v22, %v553_v21 }
 0xa0e   :  { %1783 = vtanh.f32 %v2285_v23 }
 0xa14   :  { %v1784_v24 = vpop.eup %1783 }
 0xa15   :  { %566 = vrot.lane.b32.xlu0 %v1784_v24, %s2059_s1 }
 0xa87   :  { %v567_v25 = vpop.permute.xlu0 %566 }
 0xa88   :  { %v569_v26 = vmul.f32 %v567_v25, %v550_v19 }
 0xa8a   :  { %v572_v27 = vperm.slane %v569_v26, 0  ;;  %v571_v29 = vrot.slane %v569_v26, 1 }
 0xa8c   :  { %574 = vrot.lane.b32.xlu1 %v572_v27, %s2060_s4  ;;  %v573_v30 = vperm.slane %v571_v29, 0 }
 0xa8e   :  { %576 = vrot.lane.b32.xlu0 %v573_v30, %s2060_s4 }
 0xafe   :  { %v575_v31 = vpop.permute.xlu1 %574 }
 0xaff   :  { %v580_v58 = vmul.f32 %v575_v31, %v2221_v39 }
 0xb00   :  { %v577_v32 = vpop.permute.xlu0 %576 }
 0xb01   :  { %v581_v33 = vmul.f32 %v577_v32, %v2217_v35  ;;  %v582_v34 = vsel %vm152_vm4, %v580_v58, 0.0 }
 0xb02   :  { %583 = vadd.xlane.f32.xlu2 %v582_v34 }
 0xb03   :  { %v585_v36 = vsel %vm152_vm4, %v581_v33, 0.0 }
 0xb04   :  { %586 = vadd.xlane.f32.xlu1 %v585_v36 }
 0xb75   :  { %v584_v37 = vpop.xlane.xlu2 %583 }
 0xb76   :  { %v590_v40 = vperm.slane %v584_v37, %v2225_v44 }
 0xb77   :  { %v587_v38 = vpop.xlane.xlu1 %586 }
 0xb78   :  { %v591_v41 = vperm.slane %v587_v38, %v2225_v44 }
 0xb7a   :  { %v592_v42 = vsel %vm258_vm5, %v591_v41, %v590_v40 }
 0xb7b   :  { %v594_v43 = vsel %vm261_vm6, %v592_v42, -inf }
 0xb7c   :  { %595 = vmax.xlane.f32.xlu0 %v594_v43 }
 0xbef   :  { %v596_v45 = vpop.xlane.xlu0 %595 }
 0xbf0   :  { %v598_v46 = vperm.slane %v596_v45, 0  ;;  %v599_v47 = vperm.slane %v596_v45, 1 }
 0xbf2   :  { %v602_v48 = vsub.f32 %v584_v37, %v598_v46  ;;  %v603_v49 = vsub.f32 %v587_v38, %v599_v47 }
 0xbf4   :  { %v604_v50 = vmul.f32 1.442695, %v602_v48  ;;  %v606_v51 = vmul.f32 1.442695, %v603_v49 }
 0xbf6   :  { %1785 = vpow2.f32 %v604_v50 }
 0xbf7   :  { %1787 = vpow2.f32 %v606_v51 }
 0xbfc   :  { %v1786_v52 = vpop.eup %1785 }
 0xbfd   :  { %v1788_v53 = vpop.eup %1787  ;;  %611 = vperm.xlu2 %1742, %v1786_v52  }
 0xbfe   :  { %614 = vperm.xlu1 %1744, %v1788_v53  }
 0xc57   :  { %v612_v54 = vpop.permute.xlu2 %611 }
 0xc58   :  { %v616_v56 = vperm.slane %v612_v54, %v2225_v44  ;;  %v625_v62 = vmul.f32 %v612_v54, %v2221_v39 }
 0xc5a   :  { %v627_v4 = vsel %vm152_vm4, %v625_v62, 0.0 }
 0xc5b   :  { %v628_v28 = vrot.slane %v627_v4, 4 }
 0xc5d   :  { %v629_v8 = vadd.f32 %v628_v28, %v627_v4 }
 0xc5f   :  { %v630_v10 = vrot.slane %v629_v8, 2 }
 0xc61   :  { %v631_v13 = vadd.f32 %v630_v10, %v629_v8 }
 0xc63   :  { %v632_v15 = vrot.slane %v631_v13, 1 }
 0xc65   :  { %v633_v19 = vadd.f32 %v632_v15, %v631_v13 }
 0xc70   :  { %v615_v55 = vpop.permute.xlu1 %614 }
 0xc71   :  { %v617_v57 = vperm.slane %v615_v55, %v2225_v44  ;;  %v626_v61 = vmul.f32 %v615_v55, %v2217_v35 }
 0xc73   :  { %v618_v59 = vsel %vm258_vm5, %v617_v57, %v616_v56  ;;  %v634_v63 = vsel %vm152_vm4, %v626_v61, 0.0 }
 0xc74   :  { %v620_v60 = vsel %vm261_vm6, %v618_v59, 0.0  ;;  %v635_v6 = vrot.slane %v634_v63, 4 }
 0xc75   :  { %621 = vadd.xlane.f32.xlu0 %v620_v60 }
 0xc76   :  { %v636_v7 = vadd.f32 %v635_v6, %v634_v63 }
 0xc78   :  { %v637_v9 = vrot.slane %v636_v7, 2 }
 0xc7a   :  { %v638_v11 = vadd.f32 %v637_v9, %v636_v7 }
 0xc7c   :  { %v639_v14 = vrot.slane %v638_v11, 1 }
 0xc7e   :  { %v640_v17 = vadd.f32 %v639_v14, %v638_v11 }
 0xc89   :  { %674 = vrot.lane.b32.xlu0 %v569_v26, %s2060_s4 }
 0xce8   :  { %v622_v12 = vpop.xlane.xlu0 %621 }
 0xce9   :  { %1789 = vrcp.f32 %v622_v12 }
 0xcef   :  { %v1790_v16 = vpop.eup %1789 }
 0xcf0   :  { %v643_v18 = vrot.slane %v1790_v16, 1  ;;  %v646_v21 = vmul.f32 %v1790_v16, %v633_v19 }
 0xcf2   :  { %v647_v20 = vmul.f32 %v643_v18, %v640_v17 }
 0xcf4   :  { %v650_v22 = vrot.slane %v647_v20, 7 }
 0xcf6   :  { %v651_v24 = vsel %vm258_vm5, %v650_v22, %v646_v21 }
 0xcf7   :  { %1708 = vmatmul.msk.f32.vlgmr.msrb.gmra.mxu2 %vm152_vm4, %v651_v24 }
 0xcf8   :  { %1332 = vmatpush.msrb.mxu2 %v2175_v0 }
 0xcfa   :  { %1333 = vmatpush.msrb.mxu2 %v2179_v2 }
 0xcfb   :  { %v675_v25 = vpop.permute.xlu0 %674 }
 0xcfc   :  { %1709 = vmatmul.msk.f32.vlgmr.msrb.gmra.mxu3 %vm152_vm4, %v675_v25 }
 0xcfd   :  { %1356 = vmatpush.msrb.mxu3 %v2177_v1 }
 0xcff   :  { %1357 = vmatpush.msrb.mxu3 %v2183_v3 }
 0xd7a   :  { %v671_v26 = vpop.f32.mrf.mxu2 }
 0xd7f   :  { %v695_v27 = vpop.f32.mrf.mxu3 }
 0xd80   :  { %v696_v29 = vadd.f32 %v695_v27, %v671_v26 }
 0xd82   :  { %v698_v30 = vadd.f32 %v2206_v5, %v696_v29 }
 0xd84   :  { %1791 = vtanh.f32 %v698_v30  ;;  %v1710_v58 = vmul.f32 -1.442695, %v698_v30 }
 0xd86   :  { %1793 = vpow2.f32 %v1710_v58 }
 0xd8a   :  { %v1792_v31 = vpop.eup %1791 }
 0xd8b   :  { %721 = vrot.lane.b32.xlu2 %v1792_v31, %s2057_s22 }
 0xd8c   :  { %v1794_v0 = vpop.eup %1793 }
 0xd8d   :  { %v702_v2 = vadd.f32 1.0, %v1794_v0 }
 0xd8f   :  { %1795 = vrcp.f32 %v702_v2  ;;  %v714_v3 = vand.u32 2147483648, %v702_v2  ;;  %vm708_vm0 = vweird.f32 %v702_v2  ;;  %v712_v37 = vand.u32 2147483647, %v702_v2 }
 0xd91   :  { %v715_v40 = vor.u32 1.1754944e-38, %v714_v3  ;;  %vm713_vm2 = vcmp.eq.f32.partialorder %v712_v37, 8.507059e+37 }
 0xd95   :  { %v1796_v32 = vpop.eup %1795 }
 0xd96   :  { %v704_v33 = vmul.f32 %v1796_v32, %v702_v2  ;;  %vm709_vm15 = vweird.f32 %v1796_v32 }
 0xd97   :  { %vm710_vm1 = vmor %vm708_vm0, %vm709_vm15 }
 0xd98   :  { %v705_v34 = vsub.f32 1.0, %v704_v33 }
 0xd9a   :  { %v706_v1 = vmul.f32 %v1796_v32, %v705_v34 }
 0xd9c   :  { %v707_v36 = vadd.f32 %v1796_v32, %v706_v1 }
 0xd9e   :  { %v711_v38 = vsel %vm710_vm1, %v1796_v32, %v707_v36 }
 0xd9f   :  { %v716_v42 = vsel %vm713_vm2, %v715_v40, %v711_v38 }
 0xda0   :  { %v719_v45 = vmul.f32 %v716_v42, %v2285_v23 }
 0xde5   :  { %v722_v41 = vpop.permute.xlu2 %721 }
 0xde6   :  { %v724_v43 = vmul.f32 %v722_v41, %v716_v42 }
 0xde8   :  { %726 = vrot.lane.b32.xlu1 %v724_v43, %s2058_s26 }
 0xe5a   :  { %v727_v46 = vpop.permute.xlu1 %726 }
 0xe5b   :  { %v2319_v47 = vadd.f32 %v727_v46, %v719_v45 }
 0xe5d   :  { %1797 = vtanh.f32 %v2319_v47 }
 0xe63   :  { %v1798_v48 = vpop.eup %1797 }
 0xe64   :  { %732 = vrot.lane.b32.xlu2 %v1798_v48, %s2059_s1 }
 0xebe   :  { %v733_v49 = vpop.permute.xlu2 %732 }
 0xebf   :  { %v735_v50 = vmul.f32 %v733_v49, %v716_v42 }
 0xec1   :  { %v738_v51 = vperm.slane %v735_v50, 0  ;;  %v737_v52 = vrot.slane %v735_v50, 1 }
 0xec3   :  { %740 = vrot.lane.b32.xlu0 %v738_v51, %s2060_s4  ;;  %v739_v53 = vperm.slane %v737_v52, 0 }
 0xec5   :  { %742 = vrot.lane.b32.xlu1 %v739_v53, %s2060_s4 }
 0xf35   :  { %v741_v54 = vpop.permute.xlu0 %740 }
 0xf36   :  { %v746_v23 = vmul.f32 %v741_v54, %v2221_v39 }
 0xf37   :  { %v743_v55 = vpop.permute.xlu1 %742 }
 0xf38   :  { %v747_v56 = vmul.f32 %v743_v55, %v2217_v35  ;;  %v748_v57 = vsel %vm152_vm4, %v746_v23, 0.0 }
 0xf39   :  { %749 = vadd.xlane.f32.xlu2 %v748_v57 }
 0xf3a   :  { %v751_v59 = vsel %vm152_vm4, %v747_v56, 0.0 }
 0xf3b   :  { %752 = vadd.xlane.f32.xlu0 %v751_v59 }
 0xfac   :  { %v750_v60 = vpop.xlane.xlu2 %749 }
 0xfad   :  { %v756_v62 = vperm.slane %v750_v60, %v2225_v44 }
 0xfae   :  { %v753_v61 = vpop.xlane.xlu0 %752 }
 0xfaf   :  { %v757_v63 = vperm.slane %v753_v61, %v2225_v44 }
 0xfb1   :  { %v758_v4 = vsel %vm258_vm5, %v757_v63, %v756_v62 }
 0xfb2   :  { %v760_v6 = vsel %vm261_vm6, %v758_v4, -inf }
 0xfb3   :  { %761 = vmax.xlane.f32.xlu1 %v760_v6 }
0x1026   :  { %v762_v28 = vpop.xlane.xlu1 %761 }
0x1027   :  { %v764_v7 = vperm.slane %v762_v28, 0  ;;  %v765_v8 = vperm.slane %v762_v28, 1 }
0x1029   :  { %v768_v9 = vsub.f32 %v750_v60, %v764_v7  ;;  %v769_v10 = vsub.f32 %v753_v61, %v765_v8 }
0x102b   :  { %v770_v11 = vmul.f32 1.442695, %v768_v9  ;;  %v772_v12 = vmul.f32 1.442695, %v769_v10 }
0x102d   :  { %1799 = vpow2.f32 %v770_v11 }
0x102e   :  { %1801 = vpow2.f32 %v772_v12 }
0x1033   :  { %v1800_v13 = vpop.eup %1799 }
0x1034   :  { %v1802_v14 = vpop.eup %1801  ;;  %777 = vperm.xlu2 %1742, %v1800_v13  }
0x1035   :  { %780 = vperm.xlu0 %1743, %v1802_v14  }
0x108e   :  { %v778_v15 = vpop.permute.xlu2 %777 }
0x108f   :  { %v782_v17 = vperm.slane %v778_v15, %v2225_v44  ;;  %v791_v22 = vmul.f32 %v778_v15, %v2221_v39 }
0x1091   :  { %v793_v25 = vsel %vm152_vm4, %v791_v22, 0.0 }
0x1092   :  { %v794_v27 = vrot.slane %v793_v25, 4 }
0x1094   :  { %v795_v30 = vadd.f32 %v794_v27, %v793_v25 }
0x1096   :  { %v796_v58 = vrot.slane %v795_v30, 2 }
0x1098   :  { %v797_v32 = vadd.f32 %v796_v58, %v795_v30 }
0x109a   :  { %v798_v34 = vrot.slane %v797_v32, 1 }
0x109c   :  { %v799_v37 = vadd.f32 %v798_v34, %v797_v32 }
0x10a7   :  { %v781_v16 = vpop.permute.xlu0 %780 }
0x10a8   :  { %v783_v18 = vperm.slane %v781_v16, %v2225_v44  ;;  %v792_v21 = vmul.f32 %v781_v16, %v2217_v35 }
0x10aa   :  { %v784_v19 = vsel %vm258_vm5, %v783_v18, %v782_v17  ;;  %v800_v24 = vsel %vm152_vm4, %v792_v21, 0.0 }
0x10ab   :  { %v786_v20 = vsel %vm261_vm6, %v784_v19, 0.0  ;;  %v801_v26 = vrot.slane %v800_v24, 4 }
0x10ac   :  { %787 = vadd.xlane.f32.xlu1 %v786_v20 }
0x10ad   :  { %v802_v29 = vadd.f32 %v801_v26, %v800_v24 }
0x10af   :  { %v803_v31 = vrot.slane %v802_v29, 2 }
0x10b1   :  { %v804_v0 = vadd.f32 %v803_v31, %v802_v29 }
0x10b3   :  { %v805_v33 = vrot.slane %v804_v0, 1 }
0x10b5   :  { %v806_v36 = vadd.f32 %v805_v33, %v804_v0 }
0x10c5   :  { %840 = vrot.lane.b32.xlu1 %v735_v50, %s2060_s4 }
0x111f   :  { %v788_v2 = vpop.xlane.xlu1 %787 }
0x1120   :  { %1803 = vrcp.f32 %v788_v2 }
0x1126   :  { %v1804_v1 = vpop.eup %1803 }
0x1127   :  { %v809_v3 = vrot.slane %v1804_v1, 1  ;;  %v812_v40 = vmul.f32 %v1804_v1, %v799_v37 }
0x1129   :  { %v813_v38 = vmul.f32 %v809_v3, %v806_v36 }
0x112b   :  { %v816_v41 = vrot.slane %v813_v38, 7 }
0x112d   :  { %v817_v42 = vsel %vm258_vm5, %v816_v41, %v812_v40 }
0x112e   :  { %1711 = vmatmul.msk.f32.vlgmr.msra.gmra.mxu0 %vm152_vm4, %v817_v42 }
0x1137   :  { %v841_v43 = vpop.permute.xlu1 %840 }
0x1138   :  { %1712 = vmatmul.msk.f32.vlgmr.msra.gmra.mxu1 %vm152_vm4, %v841_v43 }
0x11ab   :  { %v837_v45 = vpop.f32.mrf.mxu0 }
0x11b5   :  { %v861_v46 = vpop.f32.mrf.mxu1 }
0x11b6   :  { %v862_v48 = vadd.f32 %v861_v46, %v837_v45 }
0x11b8   :  { %v864_v49 = vadd.f32 %v2206_v5, %v862_v48 }
0x11ba   :  { %1805 = vtanh.f32 %v864_v49  ;;  %v1713_v51 = vmul.f32 -1.442695, %v864_v49 }
0x11bc   :  { %1807 = vpow2.f32 %v1713_v51 }
0x11c0   :  { %v1806_v50 = vpop.eup %1805 }
0x11c1   :  { %887 = vrot.lane.b32.xlu0 %v1806_v50, %s2057_s22 }
0x11c2   :  { %v1808_v52 = vpop.eup %1807 }
0x11c3   :  { %v868_v53 = vadd.f32 1.0, %v1808_v52 }
0x11c5   :  { %1809 = vrcp.f32 %v868_v53  ;;  %v880_v59 = vand.u32 2147483648, %v868_v53  ;;  %vm874_vm7 = vweird.f32 %v868_v53  ;;  %v878_v60 = vand.u32 2147483647, %v868_v53 }
0x11c7   :  { %v881_v61 = vor.u32 1.1754944e-38, %v880_v59  ;;  %vm879_vm9 = vcmp.eq.f32.partialorder %v878_v60, 8.507059e+37 }
0x11cb   :  { %v1810_v54 = vpop.eup %1809 }
0x11cc   :  { %v870_v23 = vmul.f32 %v1810_v54, %v868_v53  ;;  %vm875_vm3 = vweird.f32 %v1810_v54 }
0x11cd   :  { %vm876_vm8 = vmor %vm874_vm7, %vm875_vm3 }
0x11ce   :  { %v871_v55 = vsub.f32 1.0, %v870_v23 }
0x11d0   :  { %v872_v56 = vmul.f32 %v1810_v54, %v871_v55 }
0x11d2   :  { %v873_v57 = vadd.f32 %v1810_v54, %v872_v56 }
0x11d4   :  { %v877_v5 = vsel %vm876_vm8, %v1810_v54, %v873_v57 }
0x11d5   :  { %v882_v63 = vsel %vm879_vm9, %v881_v61, %v877_v5 }
0x11d6   :  { %v885_v6 = vmul.f32 %v882_v63, %v2319_v47 }
0x1233   :  { %v888_v62 = vpop.permute.xlu0 %887 }
0x1234   :  { %v890_v4 = vmul.f32 %v888_v62, %v882_v63 }
0x1236   :  { %892 = vrot.lane.b32.xlu2 %v890_v4, %s2058_s26 }
0x1290   :  { %v893_v28 = vpop.permute.xlu2 %892 }
0x1291   :  { %v2349_v7 = vadd.f32 %v893_v28, %v885_v6  ;;  %v2378_v6 = vld [vmem:[%s2511_s3] ss:$0 sm:$0xff] }
0x1293   :  { %1811 = vtanh.f32 %v2349_v7 }
0x1299   :  { %v1812_v8 = vpop.eup %1811 }
0x129a   :  { %898 = vrot.lane.b32.xlu0 %v1812_v8, %s2059_s1 }
0x130c   :  { %v899_v9 = vpop.permute.xlu0 %898 }
0x130d   :  { %v901_v10 = vmul.f32 %v899_v9, %v882_v63 }
0x130f   :  { %v904_v11 = vperm.slane %v901_v10, 0  ;;  %v903_v12 = vrot.slane %v901_v10, 1 }
0x1311   :  { %906 = vrot.lane.b32.xlu2 %v904_v11, %s2060_s4  ;;  %v905_v13 = vperm.slane %v903_v12, 0 }
0x1313   :  { %908 = vrot.lane.b32.xlu0 %v905_v13, %s2060_s4 }
0x136b   :  { %v907_v14 = vpop.permute.xlu2 %906 }
0x136c   :  { %v912_v47 = vmul.f32 %v907_v14, %v2221_v39 }
0x136e   :  { %v914_v15 = vsel %vm152_vm4, %v912_v47, 0.0 }
0x136f   :  { %915 = vadd.xlane.f32.xlu1 %v914_v15 }
0x1385   :  { %v909_v16 = vpop.permute.xlu0 %908 }
0x1386   :  { %v913_v17 = vmul.f32 %v909_v16, %v2217_v35 }
0x1388   :  { %v917_v18 = vsel %vm152_vm4, %v913_v17, 0.0 }
0x1389   :  { %918 = vadd.xlane.f32.xlu2 %v917_v18 }
0x13e2   :  { %v916_v19 = vpop.xlane.xlu1 %915 }
0x13e3   :  { %v922_v21 = vperm.slane %v916_v19, %v2225_v44 }
0x13fc   :  { %v919_v20 = vpop.xlane.xlu2 %918 }
0x13fd   :  { %v923_v22 = vperm.slane %v919_v20, %v2225_v44 }
0x13ff   :  { %v924_v24 = vsel %vm258_vm5, %v923_v22, %v922_v21 }
0x1400   :  { %v926_v25 = vsel %vm261_vm6, %v924_v24, -inf }
0x1401   :  { %927 = vmax.xlane.f32.xlu0 %v926_v25 }
0x1474   :  { %v928_v26 = vpop.xlane.xlu0 %927 }
0x1475   :  { %v930_v27 = vperm.slane %v928_v26, 0  ;;  %v931_v29 = vperm.slane %v928_v26, 1 }
0x1477   :  { %v934_v30 = vsub.f32 %v916_v19, %v930_v27  ;;  %v935_v31 = vsub.f32 %v919_v20, %v931_v29 }
0x1479   :  { %v936_v58 = vmul.f32 1.442695, %v934_v30  ;;  %v938_v0 = vmul.f32 1.442695, %v935_v31 }
0x147b   :  { %1813 = vpow2.f32 %v936_v58 }
0x147c   :  { %1815 = vpow2.f32 %v938_v0 }
0x1481   :  { %v1814_v2 = vpop.eup %1813 }
0x1482   :  { %v1816_v32 = vpop.eup %1815  ;;  %943 = vperm.xlu2 %1742, %v1814_v2  }
0x1483   :  { %946 = vperm.xlu1 %1744, %v1816_v32   ;;  %v2390_v32 = vld [vmem:[#allocation2] sm:$0xff] }
0x14dc   :  { %v944_v33 = vpop.permute.xlu2 %943 }
0x14dd   :  { %v948_v1 = vperm.slane %v944_v33, %v2225_v44  ;;  %v957_v40 = vmul.f32 %v944_v33, %v2221_v39 }
0x14df   :  { %v959_v42 = vsel %vm152_vm4, %v957_v40, 0.0 }
0x14e0   :  { %v960_v45 = vrot.slane %v959_v42, 4 }
0x14e2   :  { %v961_v48 = vadd.f32 %v960_v45, %v959_v42 }
0x14e4   :  { %v962_v50 = vrot.slane %v961_v48, 2 }
0x14e6   :  { %v963_v53 = vadd.f32 %v962_v50, %v961_v48 }
0x14e8   :  { %v964_v23 = vrot.slane %v963_v53, 1 }
0x14ea   :  { %v965_v39 = vadd.f32 %v964_v23, %v963_v53 }
0x14f5   :  { %v947_v34 = vpop.permute.xlu1 %946 }
0x14f6   :  { %v949_v36 = vperm.slane %v947_v34, %v2225_v44  ;;  %v958_v38 = vmul.f32 %v947_v34, %v2217_v35  ;;  %v2393_v34 = vld [vmem:[#allocation2 + $0x8] sm:$0xff] }
0x14f8   :  { %v950_v3 = vsel %vm258_vm5, %v949_v36, %v948_v1  ;;  %v966_v41 = vsel %vm152_vm4, %v958_v38, 0.0 }
0x14f9   :  { %v952_v37 = vsel %vm261_vm6, %v950_v3, 0.0  ;;  %v967_v43 = vrot.slane %v966_v41, 4 }
0x14fa   :  { %953 = vadd.xlane.f32.xlu0 %v952_v37 }
0x14fb   :  { %v968_v46 = vadd.f32 %v967_v43, %v966_v41 }
0x14fd   :  { %v969_v49 = vrot.slane %v968_v46, 2 }
0x14ff   :  { %v970_v51 = vadd.f32 %v969_v49, %v968_v46 }
0x1501   :  { %v971_v54 = vrot.slane %v970_v51, 1 }
0x1503   :  { %v972_v35 = vadd.f32 %v971_v54, %v970_v51 }
0x150e   :  { %1006 = vrot.lane.b32.xlu0 %v901_v10, %s2060_s4 }
0x156d   :  { %v954_v52 = vpop.xlane.xlu0 %953 }
0x156e   :  { %1817 = vrcp.f32 %v954_v52 }
0x1574   :  { %v1818_v55 = vpop.eup %1817 }
0x1575   :  { %v975_v56 = vrot.slane %v1818_v55, 1  ;;  %v978_v59 = vmul.f32 %v1818_v55, %v965_v39 }
0x1577   :  { %v979_v57 = vmul.f32 %v975_v56, %v972_v35 }
0x1579   :  { %v982_v60 = vrot.slane %v979_v57, 7 }
0x157b   :  { %v983_v5 = vsel %vm258_vm5, %v982_v60, %v978_v59 }
0x157c   :  { %1714 = vmatmul.msk.f32.vlgmr.msra.gmra.mxu2 %vm152_vm4, %v983_v5 }
0x1580   :  { %v1007_v61 = vpop.permute.xlu0 %1006 }
0x1581   :  { %1715 = vmatmul.msk.f32.vlgmr.msra.gmra.mxu3 %vm152_vm4, %v1007_v61 }
0x15ff   :  { %v1003_v62 = vpop.f32.mrf.mxu2 }
0x1604   :  { %v1027_v63 = vpop.f32.mrf.mxu3 }
0x1605   :  { %v1028_v4 = vadd.f32 %v1027_v63, %v1003_v62 }
0x1607   :  { %v1030_v28 = vadd.f32 %v2378_v6, %v1028_v4 }
0x1609   :  { %1819 = vtanh.f32 %v1030_v28  ;;  %v1716_v9 = vmul.f32 -1.442695, %v1030_v28 }
0x160b   :  { %1821 = vpow2.f32 %v1716_v9 }
0x160f   :  { %v1820_v8 = vpop.eup %1819 }
0x1610   :  { %1053 = vrot.lane.b32.xlu2 %v1820_v8, %s2057_s22 }
0x1611   :  { %v1822_v10 = vpop.eup %1821 }
0x1612   :  { %v1034_v11 = vadd.f32 1.0, %v1822_v10 }
0x1614   :  { %1823 = vrcp.f32 %v1034_v11  ;;  %v1046_v16 = vand.u32 2147483648, %v1034_v11  ;;  %vm1040_vm11 = vweird.f32 %v1034_v11  ;;  %v1044_v17 = vand.u32 2147483647, %v1034_v11 }
0x1616   :  { %v1047_v19 = vor.u32 1.1754944e-38, %v1046_v16  ;;  %vm1045_vm13 = vcmp.eq.f32.partialorder %v1044_v17, 8.507059e+37 }
0x161a   :  { %v1824_v12 = vpop.eup %1823 }
0x161b   :  { %v1036_v13 = vmul.f32 %v1824_v12, %v1034_v11  ;;  %vm1041_vm10 = vweird.f32 %v1824_v12 }
0x161c   :  { %vm1042_vm12 = vmor %vm1040_vm11, %vm1041_vm10 }
0x161d   :  { %v1037_v14 = vsub.f32 1.0, %v1036_v13 }
0x161f   :  { %v1038_v47 = vmul.f32 %v1824_v12, %v1037_v14 }
0x1621   :  { %v1039_v15 = vadd.f32 %v1824_v12, %v1038_v47 }
0x1623   :  { %v1043_v18 = vsel %vm1042_vm12, %v1824_v12, %v1039_v15 }
0x1624   :  { %v1048_v21 = vsel %vm1045_vm13, %v1047_v19, %v1043_v18 }
0x1625   :  { %v1051_v24 = vmul.f32 %v1048_v21, %v2349_v7 }
0x166a   :  { %v1054_v20 = vpop.permute.xlu2 %1053 }
0x166b   :  { %v1056_v22 = vmul.f32 %v1054_v20, %v1048_v21 }
0x166d   :  { %1058 = vrot.lane.b32.xlu1 %v1056_v22, %s2058_s26 }
0x16df   :  { %v1059_v25 = vpop.permute.xlu1 %1058 }
0x16e0   :  { %v2384_v26 = vadd.f32 %v1059_v25, %v1051_v24 }
0x16e2   :  { %1825 = vtanh.f32 %v2384_v26 }
0x16e8   :  { %v1826_v27 = vpop.eup %1825 }
0x16e9   :  { %1064 = vrot.lane.b32.xlu2 %v1826_v27, %s2059_s1 }
0x1743   :  { %v1065_v29 = vpop.permute.xlu2 %1064 }
0x1744   :  { %v1067_v30 = vmul.f32 %v1065_v29, %v1048_v21 }
0x1746   :  { %v1070_v31 = vperm.slane %v1067_v30, 0  ;;  %v1069_v58 = vrot.slane %v1067_v30, 1 }
0x1748   :  { %1072 = vrot.lane.b32.xlu1 %v1070_v31, %s2060_s4  ;;  %v1071_v0 = vperm.slane %v1069_v58, 0 }
0x174a   :  { %1074 = vrot.lane.b32.xlu0 %v1071_v0, %s2060_s4 }
0x17ba   :  { %v1073_v2 = vpop.permute.xlu1 %1072 }
0x17bb   :  { %v1078_v7 = vmul.f32 %v2390_v32, %v1073_v2 }
0x17bc   :  { %v1075_v33 = vpop.permute.xlu0 %1074 }
0x17bd   :  { %v1079_v1 = vmul.f32 %v2393_v34, %v1075_v33  ;;  %v1080_v36 = vsel %vm152_vm4, %v1078_v7, 0.0 }
0x17be   :  { %1081 = vadd.xlane.f32.xlu2 %v1080_v36 }
0x17bf   :  { %v1083_v3 = vsel %vm152_vm4, %v1079_v1, 0.0 }
0x17c0   :  { %1084 = vadd.xlane.f32.xlu1 %v1083_v3 }
0x1831   :  { %v1082_v37 = vpop.xlane.xlu2 %1081 }
0x1832   :  { %v1088_v40 = vperm.slane %v1082_v37, %v2225_v44 }
0x1833   :  { %v1085_v38 = vpop.xlane.xlu1 %1084 }
0x1834   :  { %v1089_v41 = vperm.slane %v1085_v38, %v2225_v44 }
0x1836   :  { %v1090_v42 = vsel %vm258_vm5, %v1089_v41, %v1088_v40 }
0x1837   :  { %v1092_v43 = vsel %vm261_vm6, %v1090_v42, -inf }
0x1838   :  { %1093 = vmax.xlane.f32.xlu0 %v1092_v43 }
0x18ab   :  { %v1094_v45 = vpop.xlane.xlu0 %1093 }
0x18ac   :  { %v1096_v46 = vperm.slane %v1094_v45, 0  ;;  %v1097_v48 = vperm.slane %v1094_v45, 1 }
0x18ae   :  { %v1100_v49 = vsub.f32 %v1082_v37, %v1096_v46  ;;  %v1101_v50 = vsub.f32 %v1085_v38, %v1097_v48 }
0x18b0   :  { %v1102_v51 = vmul.f32 1.442695, %v1100_v49  ;;  %v1104_v52 = vmul.f32 1.442695, %v1101_v50 }
0x18b2   :  { %1827 = vpow2.f32 %v1102_v51 }
0x18b3   :  { %1829 = vpow2.f32 %v1104_v52 }
0x18b8   :  { %v1828_v53 = vpop.eup %1827 }
0x18b9   :  { %v1830_v54 = vpop.eup %1829  ;;  %1109 = vperm.xlu2 %1742, %v1828_v53  }
0x18ba   :  { %1112 = vperm.xlu1 %1744, %v1830_v54  }
0x1913   :  { %v1110_v23 = vpop.permute.xlu2 %1109 }
0x1914   :  { %v1114_v35 = vperm.slane %v1110_v23, %v2225_v44  ;;  %v1123_v60 = vmul.f32 %v2390_v32, %v1110_v23 }
0x1916   :  { %v1125_v61 = vsel %vm152_vm4, %v1123_v60, 0.0 }
0x1917   :  { %v1126_v63 = vrot.slane %v1125_v61, 4 }
0x1919   :  { %v1127_v28 = vadd.f32 %v1126_v63, %v1125_v61 }
0x191b   :  { %v1128_v9 = vrot.slane %v1127_v28, 2 }
0x191d   :  { %v1129_v12 = vadd.f32 %v1128_v9, %v1127_v28 }
0x191f   :  { %v1130_v14 = vrot.slane %v1129_v12, 1 }
0x1921   :  { %v1131_v17 = vadd.f32 %v1130_v14, %v1129_v12 }
0x192c   :  { %v1113_v55 = vpop.permute.xlu1 %1112 }
0x192d   :  { %v1115_v56 = vperm.slane %v1113_v55, %v2225_v44  ;;  %v1124_v59 = vmul.f32 %v2393_v34, %v1113_v55 }
0x192f   :  { %v1116_v39 = vsel %vm258_vm5, %v1115_v56, %v1114_v35  ;;  %v1132_v5 = vsel %vm152_vm4, %v1124_v59, 0.0 }
0x1930   :  { %v1118_v57 = vsel %vm261_vm6, %v1116_v39, 0.0  ;;  %v1133_v62 = vrot.slane %v1132_v5, 4 }
0x1931   :  { %1119 = vadd.xlane.f32.xlu0 %v1118_v57 }
0x1932   :  { %v1134_v4 = vadd.f32 %v1133_v62, %v1132_v5 }
0x1934   :  { %v1135_v8 = vrot.slane %v1134_v4, 2 }
0x1936   :  { %v1136_v10 = vadd.f32 %v1135_v8, %v1134_v4 }
0x1938   :  { %v1137_v13 = vrot.slane %v1136_v10, 1 }
0x193a   :  { %v1138_v15 = vadd.f32 %v1137_v13, %v1136_v10 }
0x1945   :  { %1172 = vrot.lane.b32.xlu0 %v1067_v30, %s2060_s4 }
0x19a4   :  { %v1120_v11 = vpop.xlane.xlu0 %1119 }
0x19a5   :  { %1831 = vrcp.f32 %v1120_v11 }
0x19ab   :  { %v1832_v47 = vpop.eup %1831 }
0x19ac   :  { %v1141_v16 = vrot.slane %v1832_v47, 1  ;;  %v1144_v19 = vmul.f32 %v1832_v47, %v1131_v17 }
0x19ae   :  { %v1145_v18 = vmul.f32 %v1141_v16, %v1138_v15 }
0x19b0   :  { %v1148_v20 = vrot.slane %v1145_v18, 7 }
0x19b2   :  { %v1149_v21 = vsel %vm258_vm5, %v1148_v20, %v1144_v19 }
0x19b3   :  { %1717 = vmatmul.msk.f32.vlgmr.msrb.gmra.mxu0 %vm152_vm4, %v1149_v21 }
0x19b7   :  { %v1173_v22 = vpop.permute.xlu0 %1172 }
0x19b8   :  { %1718 = vmatmul.msk.f32.vlgmr.msrb.gmra.mxu1 %vm152_vm4, %v1173_v22 }
0x1a30   :  { %v1169_v24 = vpop.f32.mrf.mxu0 }
0x1a35   :  { %v1193_v25 = vpop.f32.mrf.mxu1 }
0x1a36   :  { %v1194_v27 = vadd.f32 %v1193_v25, %v1169_v24 }
0x1a38   :  { %v1196_v29 = vadd.f32 %v2378_v6, %v1194_v27 }
0x1a3a   :  { %1833 = vtanh.f32 %v1196_v29  ;;  %v1719_v31 = vmul.f32 -1.442695, %v1196_v29 }
0x1a3c   :  { %1835 = vpow2.f32 %v1719_v31 }
0x1a40   :  { %v1834_v30 = vpop.eup %1833 }
0x1a41   :  { %1219 = vrot.lane.b32.xlu2 %v1834_v30, %s2057_s22 }
0x1a42   :  { %v1836_v58 = vpop.eup %1835 }
0x1a43   :  { %v1200_v0 = vadd.f32 1.0, %v1836_v58 }
0x1a45   :  { %1837 = vrcp.f32 %v1200_v0  ;;  %v1212_v3 = vand.u32 2147483648, %v1200_v0  ;;  %vm1206_vm15 = vweird.f32 %v1200_v0  ;;  %v1210_v37 = vand.u32 2147483647, %v1200_v0 }
0x1a47   :  { %v1213_v40 = vor.u32 1.1754944e-38, %v1212_v3  ;;  %vm1211_vm1 = vcmp.eq.f32.partialorder %v1210_v37, 8.507059e+37 }
0x1a4b   :  { %v1838_v2 = vpop.eup %1837 }
0x1a4c   :  { %v1202_v7 = vmul.f32 %v1838_v2, %v1200_v0  ;;  %vm1207_vm14 = vweird.f32 %v1838_v2 }
0x1a4d   :  { %vm1208_vm0 = vmor %vm1206_vm15, %vm1207_vm14 }
0x1a4e   :  { %v1203_v33 = vsub.f32 1.0, %v1202_v7 }
0x1a50   :  { %v1204_v1 = vmul.f32 %v1838_v2, %v1203_v33 }
0x1a52   :  { %v1205_v36 = vadd.f32 %v1838_v2, %v1204_v1 }
0x1a54   :  { %v1209_v38 = vsel %vm1208_vm0, %v1838_v2, %v1205_v36 }
0x1a55   :  { %v1214_v42 = vsel %vm1211_vm1, %v1213_v40, %v1209_v38 }
0x1a56   :  { %v1217_v45 = vmul.f32 %v1214_v42, %v2384_v26 }
0x1a9b   :  { %v1220_v41 = vpop.permute.xlu2 %1219 }
0x1a9c   :  { %v1222_v43 = vmul.f32 %v1220_v41, %v1214_v42 }
0x1a9e   :  { %1224 = vrot.lane.b32.xlu1 %v1222_v43, %s2058_s26 }
0x1b10   :  { %v1225_v46 = vpop.permute.xlu1 %1224 }
0x1b11   :  { %v2418_v48 = vadd.f32 %v1225_v46, %v1217_v45 }
0x1b13   :  { %1839 = vtanh.f32 %v2418_v48 }
0x1b19   :  { %v1840_v49 = vpop.eup %1839 }
0x1b1a   :  { %1230 = vrot.lane.b32.xlu2 %v1840_v49, %s2059_s1 }
0x1b74   :  { %v1231_v50 = vpop.permute.xlu2 %1230 }
0x1b75   :  { %v1233_v51 = vmul.f32 %v1231_v50, %v1214_v42 }
0x1b77   :  { %v1236_v52 = vperm.slane %v1233_v51, 0  ;;  %v1235_v53 = vrot.slane %v1233_v51, 1 }
0x1b79   :  { %1238 = vrot.lane.b32.xlu0 %v1236_v52, %s2060_s4  ;;  %v1237_v54 = vperm.slane %v1235_v53, 0 }
0x1b7b   :  { %1240 = vrot.lane.b32.xlu1 %v1237_v54, %s2060_s4 }
0x1beb   :  { %v1239_v23 = vpop.permute.xlu0 %1238 }
0x1bec   :  { %v1244_v26 = vmul.f32 %v2390_v32, %v1239_v23 }
0x1bed   :  { %v1241_v55 = vpop.permute.xlu1 %1240 }
0x1bee   :  { %v1245_v35 = vmul.f32 %v2393_v34, %v1241_v55  ;;  %v1246_v56 = vsel %vm152_vm4, %v1244_v26, 0.0 }
0x1bef   :  { %1247 = vadd.xlane.f32.xlu2 %v1246_v56 }
0x1bf0   :  { %v1249_v39 = vsel %vm152_vm4, %v1245_v35, 0.0 }
0x1bf1   :  { %1250 = vadd.xlane.f32.xlu0 %v1249_v39 }
0x1c62   :  { %v1248_v57 = vpop.xlane.xlu2 %1247 }
0x1c63   :  { %v1254_v60 = vperm.slane %v1248_v57, %v2225_v44 }
0x1c64   :  { %v1251_v59 = vpop.xlane.xlu0 %1250 }
0x1c65   :  { %v1255_v5 = vperm.slane %v1251_v59, %v2225_v44 }
0x1c67   :  { %v1256_v61 = vsel %vm258_vm5, %v1255_v5, %v1254_v60 }
0x1c68   :  { %v1258_v62 = vsel %vm261_vm6, %v1256_v61, -inf }
0x1c69   :  { %1259 = vmax.xlane.f32.xlu1 %v1258_v62 }
0x1cdc   :  { %v1260_v63 = vpop.xlane.xlu1 %1259 }
0x1cdd   :  { %v1262_v4 = vperm.slane %v1260_v63, 0  ;;  %v1263_v28 = vperm.slane %v1260_v63, 1 }
0x1cdf   :  { %v1266_v8 = vsub.f32 %v1248_v57, %v1262_v4  ;;  %v1267_v9 = vsub.f32 %v1251_v59, %v1263_v28 }
0x1ce1   :  { %v1268_v10 = vmul.f32 1.442695, %v1266_v8  ;;  %v1270_v11 = vmul.f32 1.442695, %v1267_v9 }
0x1ce3   :  { %1841 = vpow2.f32 %v1268_v10 }
0x1ce4   :  { %1843 = vpow2.f32 %v1270_v11 }
0x1ce9   :  { %v1842_v12 = vpop.eup %1841 }
0x1cea   :  { %v1844_v13 = vpop.eup %1843  ;;  %1275 = vperm.xlu2 %1742, %v1842_v12  }
0x1ceb   :  { %1278 = vperm.xlu0 %1743, %v1844_v13  }
0x1d44   :  { %v1276_v14 = vpop.permute.xlu2 %1275 }
0x1d45   :  { %v1280_v15 = vperm.slane %v1276_v14, %v2225_v44  ;;  %v1289_v20 = vmul.f32 %v2390_v32, %v1276_v14 }
0x1d47   :  { %v1291_v22 = vsel %vm152_vm4, %v1289_v20, 0.0 }
0x1d48   :  { %v1292_v25 = vrot.slane %v1291_v22, 4 }
0x1d4a   :  { %v1293_v29 = vadd.f32 %v1292_v25, %v1291_v22 }
0x1d4c   :  { %v1294_v31 = vrot.slane %v1293_v29, 2 }
0x1d4e   :  { %v1295_v2 = vadd.f32 %v1294_v31, %v1293_v29 }
0x1d50   :  { %v1296_v33 = vrot.slane %v1295_v2, 1 }
0x1d52   :  { %v1297_v37 = vadd.f32 %v1296_v33, %v1295_v2 }
0x1d5d   :  { %v1279_v47 = vpop.permute.xlu0 %1278 }
0x1d5e   :  { %v1281_v16 = vperm.slane %v1279_v47, %v2225_v44  ;;  %v1290_v19 = vmul.f32 %v2393_v34, %v1279_v47 }
0x1d60   :  { %v1282_v17 = vsel %vm258_vm5, %v1281_v16, %v1280_v15  ;;  %v1298_v21 = vsel %vm152_vm4, %v1290_v19, 0.0 }
0x1d61   :  { %v1284_v18 = vsel %vm261_vm6, %v1282_v17, 0.0  ;;  %v1299_v24 = vrot.slane %v1298_v21, 4 }
0x1d62   :  { %1285 = vadd.xlane.f32.xlu1 %v1284_v18 }
0x1d63   :  { %v1300_v27 = vadd.f32 %v1299_v24, %v1298_v21 }
0x1d65   :  { %v1301_v30 = vrot.slane %v1300_v27, 2 }
0x1d67   :  { %v1302_v58 = vadd.f32 %v1301_v30, %v1300_v27 }
0x1d69   :  { %v1303_v7 = vrot.slane %v1302_v58, 1 }
0x1d6b   :  { %v1304_v36 = vadd.f32 %v1303_v7, %v1302_v58 }
0x1d7b   :  { %1338 = vrot.lane.b32.xlu1 %v1233_v51, %s2060_s4 }
0x1dd5   :  { %v1286_v0 = vpop.xlane.xlu1 %1285 }
0x1dd6   :  { %1845 = vrcp.f32 %v1286_v0 }
0x1ddc   :  { %v1846_v1 = vpop.eup %1845 }
0x1ddd   :  { %v1307_v3 = vrot.slane %v1846_v1, 1  ;;  %v1310_v40 = vmul.f32 %v1846_v1, %v1297_v37 }
0x1ddf   :  { %v1311_v38 = vmul.f32 %v1307_v3, %v1304_v36 }
0x1de1   :  { %v1314_v41 = vrot.slane %v1311_v38, 7 }
0x1de3   :  { %v1315_v42 = vsel %vm258_vm5, %v1314_v41, %v1310_v40 }
0x1de4   :  { %1720 = vmatmul.msk.f32.vlgmr.msrb.gmra.mxu2 %vm152_vm4, %v1315_v42 }
0x1ded   :  { %v1339_v43 = vpop.permute.xlu1 %1338 }
0x1dee   :  { %1721 = vmatmul.msk.f32.vlgmr.msrb.gmra.mxu3 %vm152_vm4, %v1339_v43 }
0x1e67   :  { %v1335_v45 = vpop.f32.mrf.mxu2 }
0x1e71   :  { %v1359_v46 = vpop.f32.mrf.mxu3 }
0x1e72   :  { %v1360_v49 = vadd.f32 %v1359_v46, %v1335_v45 }
0x1e74   :  { %v1362_v50 = vadd.f32 %v2378_v6, %v1360_v49  ;;  %v1492_v49 = vld [vmem:[#allocation8 + $0x18] sm:$0xff] }
0x1e75   :  { %1527 = vmatpush.msra.mxu0 %v1492_v49 }
0x1e76   :  { %1847 = vtanh.f32 %v1362_v50  ;;  %v1722_v52 = vmul.f32 -1.442695, %v1362_v50 }
0x1e78   :  { %1849 = vpow2.f32 %v1722_v52 }
0x1e7c   :  { %v1848_v51 = vpop.eup %1847 }
0x1e7d   :  { %1385 = vrot.lane.b32.xlu0 %v1848_v51, %s2057_s22  ;;  %v1490_v51 = vld [vmem:[#allocation8 + $0x8] sm:$0xff] }
0x1e7e   :  { %v1850_v53 = vpop.eup %1849 }
0x1e7f   :  { %v1366_v54 = vadd.f32 1.0, %v1850_v53  ;;  %v1489_v53 = vld [vmem:[#allocation8] sm:$0xff] }
0x1e81   :  { %1851 = vrcp.f32 %v1366_v54  ;;  %v1378_v39 = vand.u32 2147483648, %v1366_v54  ;;  %vm1372_vm3 = vweird.f32 %v1366_v54  ;;  %v1376_v57 = vand.u32 2147483647, %v1366_v54 }
0x1e83   :  { %v1379_v59 = vor.u32 1.1754944e-38, %v1378_v39  ;;  %vm1377_vm8 = vcmp.eq.f32.partialorder %v1376_v57, 8.507059e+37 }
0x1e87   :  { %v1852_v23 = vpop.eup %1851 }
0x1e88   :  { %v1368_v26 = vmul.f32 %v1852_v23, %v1366_v54  ;;  %vm1373_vm2 = vweird.f32 %v1852_v23 }
0x1e89   :  { %vm1374_vm7 = vmor %vm1372_vm3, %vm1373_vm2 }
0x1e8a   :  { %v1369_v55 = vsub.f32 1.0, %v1368_v26 }
0x1e8c   :  { %v1370_v35 = vmul.f32 %v1852_v23, %v1369_v55 }
0x1e8e   :  { %v1371_v56 = vadd.f32 %v1852_v23, %v1370_v35 }
0x1e90   :  { %v1375_v6 = vsel %vm1374_vm7, %v1852_v23, %v1371_v56 }
0x1e91   :  { %v1380_v5 = vsel %vm1377_vm8, %v1379_v59, %v1375_v6 }
0x1e92   :  { %v1383_v62 = vmul.f32 %v1380_v5, %v2418_v48 }
0x1eef   :  { %v1386_v60 = vpop.permute.xlu0 %1385 }
0x1ef0   :  { %v1388_v61 = vmul.f32 %v1386_v60, %v1380_v5 }
0x1ef2   :  { %1390 = vrot.lane.b32.xlu2 %v1388_v61, %s2058_s26 }
0x1f4c   :  { %v1391_v63 = vpop.permute.xlu2 %1390 }
0x1f4d   :  { %v1393_v4 = vadd.f32 %v1391_v63, %v1383_v62 }
0x1f4f   :  { %1853 = vtanh.f32 %v1393_v4  ;;  %v2062_v4 = vmov 2.0  }
0x1f55   :  { %v1854_v28 = vpop.eup %1853 }
0x1f56   :  { %1396 = vrot.lane.b32.xlu0 %v1854_v28, %s2059_s1 }
0x1fc8   :  { %v1397_v8 = vpop.permute.xlu0 %1396 }
0x1fc9   :  { %v1399_v9 = vmul.f32 %v1397_v8, %v1380_v5  ;;  %v1746_v8 = vld [vmem:[%s2513_s5] ss:$0 sm:$0xff] }
0x1fcb   :  { %v1402_v10 = vperm.slane %v1399_v9, 0  ;;  %v1401_v11 = vrot.slane %v1399_v9, 1 }
0x1fcd   :  { %1404 = vrot.lane.b32.xlu2 %v1402_v10, %s2060_s4  ;;  %v1403_v12 = vperm.slane %v1401_v11, 0 }
0x1fcf   :  { %1406 = vrot.lane.b32.xlu1 %v1403_v12, %s2060_s4 }
0x2027   :  { %v1405_v13 = vpop.permute.xlu2 %1404 }
0x2028   :  { %v1410_v14 = vmul.f32 %v2390_v32, %v1405_v13 }
0x202a   :  { %v1412_v48 = vsel %vm152_vm4, %v1410_v14, 0.0 }
0x202b   :  { %1413 = vadd.xlane.f32.xlu0 %v1412_v48 }
0x2041   :  { %v1407_v47 = vpop.permute.xlu1 %1406 }
0x2042   :  { %v1411_v15 = vmul.f32 %v2393_v34, %v1407_v47 }
0x2044   :  { %v1415_v16 = vsel %vm152_vm4, %v1411_v15, 0.0 }
0x2045   :  { %1416 = vadd.xlane.f32.xlu2 %v1415_v16 }
0x209e   :  { %v1414_v17 = vpop.xlane.xlu0 %1413 }
0x209f   :  { %v1420_v19 = vperm.slane %v1414_v17, %v2225_v44 }
0x20b8   :  { %v1417_v18 = vpop.xlane.xlu2 %1416 }
0x20b9   :  { %v1421_v20 = vperm.slane %v1417_v18, %v2225_v44 }
0x20bb   :  { %v1422_v21 = vsel %vm258_vm5, %v1421_v20, %v1420_v19 }
0x20bc   :  { %v1424_v22 = vsel %vm261_vm6, %v1422_v21, -inf }
0x20bd   :  { %1425 = vmax.xlane.f32.xlu1 %v1424_v22 }
0x2130   :  { %v1426_v24 = vpop.xlane.xlu1 %1425 }
0x2131   :  { %v1428_v25 = vperm.slane %v1426_v24, 0  ;;  %v1429_v27 = vperm.slane %v1426_v24, 1 }
0x2133   :  { %v1432_v29 = vsub.f32 %v1414_v17, %v1428_v25  ;;  %v1433_v30 = vsub.f32 %v1417_v18, %v1429_v27 }
0x2135   :  { %v1434_v31 = vmul.f32 1.442695, %v1432_v29  ;;  %v1436_v58 = vmul.f32 1.442695, %v1433_v30  ;;  %v1499_v30 = vld [vmem:[#allocation10 + $0x18] sm:$0xff] }
0x2136   :  { %1603 = vmatpush.msra.mxu1 %v1499_v30 }
0x2137   :  { %1855 = vpow2.f32 %v1434_v31 }
0x2138   :  { %1857 = vpow2.f32 %v1436_v58 }
0x213d   :  { %v1856_v0 = vpop.eup %1855 }
0x213e   :  { %v1858_v2 = vpop.eup %1857  ;;  %1441 = vperm.xlu0 %1743, %v1856_v0   ;;  %v1498_v0 = vld [vmem:[#allocation10 + $0x10] sm:$0xff] }
0x213f   :  { %1444 = vperm.xlu2 %1742, %v1858_v2   ;;  %1604 = vmatpush.msra.mxu1 %v1498_v0 }
0x2199   :  { %v1445_v7 = vpop.permute.xlu2 %1444 }
0x219a   :  { %v1447_v1 = vperm.slane %v1445_v7, %v2225_v44  ;;  %v1456_v38 = vmul.f32 %v2393_v34, %v1445_v7 }
0x219c   :  { %v1464_v41 = vsel %vm152_vm4, %v1456_v38, 0.0 }
0x219d   :  { %v1465_v43 = vrot.slane %v1464_v41, 4 }
0x219f   :  { %v1466_v46 = vadd.f32 %v1465_v43, %v1464_v41 }
0x21a1   :  { %v1467_v52 = vrot.slane %v1466_v46, 2 }
0x21a3   :  { %v1468_v34 = vadd.f32 %v1467_v52, %v1466_v46  ;;  %v1494_v46 = vld [vmem:[%s2514_s6] sm:$0x1] }
0x21a5   :  { %v1469_v26 = vrot.slane %v1468_v34, 1 }
0x21a7   :  { %v1470_v56 = vadd.f32 %v1469_v26, %v1468_v34  ;;  %v1747_v26 = vld [vmem:[%s2517_s9] ss:$0 sm:$0xff] }
0x21b0   :  { %v1442_v33 = vpop.permute.xlu0 %1441 }
0x21b1   :  { %v1446_v36 = vperm.slane %v1442_v33, %v2225_v44  ;;  %v1455_v40 = vmul.f32 %v2390_v32, %v1442_v33  ;;  %v1491_v44 = vld [vmem:[#allocation8 + $0x10] sm:$0xff]  ;;  %v1497_v33 = vld [vmem:[#allocation10 + $0x8] sm:$0xff] }
0x21b2   :  { %1528 = vmatpush.msra.mxu0 %v1491_v44  ;;  %1605 = vmatpush.msra.mxu1 %v1497_v33 }
0x21b3   :  { %v1448_v3 = vsel %vm258_vm5, %v1447_v1, %v1446_v36  ;;  %v1457_v42 = vsel %vm152_vm4, %v1455_v40, 0.0 }
0x21b4   :  { %v1450_v37 = vsel %vm261_vm6, %v1448_v3, 0.0  ;;  %v1458_v45 = vrot.slane %v1457_v42, 4  ;;  %1529 = vmatpush.msra.mxu0 %v1490_v51  ;;  %vm1511_vm6 = vcmask 261120   ;;  %v1496_v3 = vld [vmem:[#allocation10] sm:$0xff]  ;;  %v1495_v51 = vld [vmem:[%s2515_s7] sm:$0x1] }
0x21b5   :  { %1451 = vadd.xlane.f32.xlu1 %v1450_v37  ;;  %1606 = vmatpush.msra.mxu1 %v1496_v3 }
0x21b6   :  { %v1459_v50 = vadd.f32 %v1458_v45, %v1457_v42  ;;  %1530 = vmatpush.msra.mxu0 %v1489_v53 }
0x21b8   :  { %v1460_v54 = vrot.slane %v1459_v50, 2 }
0x21ba   :  { %v1461_v23 = vadd.f32 %v1460_v54, %v1459_v50 }
0x21bc   :  { %v1462_v55 = vrot.slane %v1461_v23, 1 }
0x21be   :  { %v1463_v57 = vadd.f32 %v1462_v55, %v1461_v23 }
0x21ce   :  { %1478 = vrot.lane.b32.xlu1 %v1399_v9, %s2060_s4 }
0x2228   :  { %v1452_v32 = vpop.xlane.xlu1 %1451 }
0x2229   :  { %1859 = vrcp.f32 %v1452_v32 }
0x222a   :  { %1861 = vrcp.f32 %v2062_v4 }
0x222f   :  { %v1860_v35 = vpop.eup %1859 }
0x2230   :  { %v1473_v39 = vrot.slane %v1860_v35, 1  ;;  %v1476_v59 = vmul.f32 %v1860_v35, %v1463_v57  ;;  %v1862_v28 = vpop.eup %1861 }
0x2231   :  { %v1545_v9 = vmul.f32 2.0, %v1862_v28 }
0x2232   :  { %v1477_v6 = vmul.f32 %v1473_v39, %v1470_v56 }
0x2233   :  { %v1546_v13 = vsub.f32 1.0, %v1545_v9  ;;  %v1506_v9 = vld [vmem:[#allocation11 + $0x18] sm:$0xff] }
0x2234   :  { %v1483_v60 = vrot.slane %v1477_v6, 7  ;;  %1671 = vmatpush.msra.mxu2 %v1506_v9 }
0x2235   :  { %v1547_v15 = vmul.f32 %v1862_v28, %v1546_v13 }
0x2236   :  { %v1484_v5 = vsel %vm258_vm5, %v1483_v60, %v1476_v59  ;;  %vm1536_vm5 = vcmask 254976  }
0x2237   :  { %1485 = vrot.lane.b32.xlu0 %v1484_v5, %s2058_s26  ;;  %v1548_v21 = vadd.f32 %v1862_v28, %v1547_v15 }
0x2240   :  { %v1479_v61 = vpop.permute.xlu1 %1478 }
0x22a9   :  { %v1486_v62 = vpop.permute.xlu0 %1485 }
0x22aa   :  { %v1488_v63 = vsel %vm152_vm4, %v1479_v61, %v1486_v62  ;;  %vm1549_vm4 = vweird.f32 %v1862_v28 }
0x22ab   :  { %1723 = vmatmul.msk.f32.vlgmr.msra.gmra.mxu0 %vm1511_vm6, %v1488_v63  ;;  %v2477_v29 = vsel %vm1549_vm4, %v1862_v28, %v1548_v21 }
0x2328   :  { %v1532_v10 = vpop.f32.mrf.mxu0 }
0x2329   :  { %v1533_v11 = vadd.f32 %v1746_v8, %v1532_v10 }
0x232b   :  { %v1535_v12 = vmax.f32 %v1533_v11, 0.0 }
0x232d   :  { %v1537_v14 = vsel %vm1536_vm5, %v1535_v12, 0.0  ;;  %v1552_v48 = vmul.f32 %v1535_v12, %v1535_v12 }
0x232e   :  { %v1538_v47 = vrot.slane %v1537_v14, 4 }
0x232f   :  { %v1553_v16 = vsel %vm1536_vm5, %v1552_v48, 0.0  ;;  %v1504_v48 = vld [vmem:[#allocation11 + $0x8] sm:$0xff] }
0x2330   :  { %v1539_v17 = vadd.f32 %v1538_v47, %v1537_v14  ;;  %v1554_v18 = vrot.slane %v1553_v16, 4 }
0x2332   :  { %v1540_v19 = vrot.slane %v1539_v17, 2  ;;  %v1555_v20 = vadd.f32 %v1554_v18, %v1553_v16  ;;  %v1503_v16 = vld [vmem:[#allocation11] sm:$0xff] }
0x2334   :  { %v1541_v22 = vadd.f32 %v1540_v19, %v1539_v17  ;;  %v1556_v24 = vrot.slane %v1555_v20, 2 }
0x2336   :  { %v1542_v25 = vrot.slane %v1541_v22, 1  ;;  %v1557_v27 = vadd.f32 %v1556_v24, %v1555_v20 }
0x2338   :  { %v1543_v31 = vadd.f32 %v1542_v25, %v1541_v22  ;;  %v1558_v58 = vrot.slane %v1557_v27, 1  ;;  %v1501_v25 = vld [vmem:[%s2518_s10] sm:$0x1]  ;;  %s2063_s10 = smov [#allocation13]  }
0x2339   :  { %s1686_s20 = sshll.u32 %s2063_s10, 4  ;;  %s1687_s20 = int_to_ptr.vmem [resolvable:$true] %s1686_s20 }
0x233a   :  { %v1551_v2 = vmul.f32 %v2477_v29, %v1543_v31  ;;  %v1559_v7 = vadd.f32 %v1558_v58, %v1557_v27  ;;  %v1502_v31 = vld [vmem:[%s2519_s11] sm:$0x1] }
0x233c   :  { %v1560_v1 = vmul.f32 %v1559_v7, %v2477_v29  ;;  %v1561_v36 = vmul.f32 %v1551_v2, %v1551_v2 }
0x233e   :  { %v1562_v37 = vsub.f32 %v1560_v1, %v1561_v36  ;;  %v1748_v36 = vld [vmem:[%s2521_s13] ss:$0 sm:$0xff] }
0x2340   :  { %v1563_v38 = vadd.f32 1e-05, %v1562_v37 }
0x2342   :  { %1863 = vrsqrt.f32 %v1563_v38  ;;  %vm1570_vm10 = vweird.f32 %v1563_v38 }
0x2348   :  { %v1864_v40 = vpop.eup %1863 }
0x2349   :  { %v1565_v41 = vmul.f32 %v1864_v40, %v1563_v38  ;;  %vm1571_vm9 = vweird.f32 %v1864_v40 }
0x234a   :  { %vm1572_vm11 = vmor %vm1570_vm10, %vm1571_vm9 }
0x234b   :  { %v1566_v42 = vmul.f32 %v1864_v40, %v1565_v41 }
0x234d   :  { %v1567_v43 = vmul.f32 0.5, %v1566_v42 }
0x234f   :  { %v1568_v45 = vsub.f32 1.5, %v1567_v43 }
0x2351   :  { %v1569_v49 = vmul.f32 %v1864_v40, %v1568_v45 }
0x2353   :  { %v1573_v44 = vsel %vm1572_vm11, %v1864_v40, %v1569_v49 }
0x2354   :  { %v1574_v50 = vmul.f32 %v1573_v44, %v1494_v46 }
0x2356   :  { %v1576_v52 = vperm.slane %v1574_v50, 0  ;;  %v1579_v53 = vmul.f32 %v1574_v50, %v1551_v2 }
0x2358   :  { %v1580_v54 = vsub.f32 %v1495_v51, %v1579_v53  ;;  %v1578_v34 = vmul.f32 %v1576_v52, %v1535_v12  ;;  %v1505_v12 = vld [vmem:[#allocation11 + $0x10] sm:$0xff] }
0x2359   :  { %1672 = vmatpush.msra.mxu2 %v1505_v12 }
0x235a   :  { %v1582_v32 = vperm.slane %v1580_v54, 0 }
0x235b   :  { %1673 = vmatpush.msra.mxu2 %v1504_v48 }
0x235c   :  { %v1584_v23 = vadd.f32 %v1582_v32, %v1578_v34 }
0x235d   :  { %1674 = vmatpush.msra.mxu2 %v1503_v16 }
0x235e   :  { %1724 = vmatmul.msk.f32.vlgmr.msra.gmra.mxu1 %vm1511_vm6, %v1584_v23 }
0x23db   :  { %v1608_v55 = vpop.f32.mrf.mxu1 }
0x23dc   :  { %v1609_v35 = vadd.f32 %v1747_v26, %v1608_v55 }
0x23de   :  { %v1611_v56 = vmax.f32 %v1609_v35, 0.0 }
0x23e0   :  { %v1612_v39 = vsel %vm1536_vm5, %v1611_v56, 0.0  ;;  %v1620_v57 = vmul.f32 %v1611_v56, %v1611_v56 }
0x23e1   :  { %v1613_v6 = vrot.slane %v1612_v39, 4 }
0x23e2   :  { %v1621_v59 = vsel %vm1536_vm5, %v1620_v57, 0.0 }
0x23e3   :  { %v1614_v60 = vadd.f32 %v1613_v6, %v1612_v39  ;;  %v1622_v5 = vrot.slane %v1621_v59, 4 }
0x23e5   :  { %v1615_v61 = vrot.slane %v1614_v60, 2  ;;  %v1623_v62 = vadd.f32 %v1622_v5, %v1621_v59 }
0x23e7   :  { %v1616_v63 = vadd.f32 %v1615_v61, %v1614_v60  ;;  %v1624_v4 = vrot.slane %v1623_v62, 2 }
0x23e9   :  { %v1617_v28 = vrot.slane %v1616_v63, 1  ;;  %v1625_v8 = vadd.f32 %v1624_v4, %v1623_v62 }
0x23eb   :  { %v1618_v10 = vadd.f32 %v1617_v28, %v1616_v63  ;;  %v1626_v11 = vrot.slane %v1625_v8, 1 }
0x23ed   :  { %v1619_v13 = vmul.f32 %v1618_v10, %v2477_v29  ;;  %v1627_v14 = vadd.f32 %v1626_v11, %v1625_v8 }
0x23ef   :  { %v1628_v47 = vmul.f32 %v1627_v14, %v2477_v29  ;;  %v1629_v15 = vmul.f32 %v1619_v13, %v1619_v13 }
0x23f1   :  { %v1630_v17 = vsub.f32 %v1628_v47, %v1629_v15 }
0x23f3   :  { %v1631_v18 = vadd.f32 1e-05, %v1630_v17 }
0x23f5   :  { %1865 = vrsqrt.f32 %v1631_v18  ;;  %vm1638_vm13 = vweird.f32 %v1631_v18 }
0x23fb   :  { %v1866_v19 = vpop.eup %1865 }
0x23fc   :  { %v1633_v20 = vmul.f32 %v1866_v19, %v1631_v18  ;;  %vm1639_vm12 = vweird.f32 %v1866_v19 }
0x23fd   :  { %vm1640_vm14 = vmor %vm1638_vm13, %vm1639_vm12 }
0x23fe   :  { %v1634_v21 = vmul.f32 %v1866_v19, %v1633_v20 }
0x2400   :  { %v1635_v22 = vmul.f32 0.5, %v1634_v21 }
0x2402   :  { %v1636_v24 = vsub.f32 1.5, %v1635_v22 }
0x2404   :  { %v1637_v27 = vmul.f32 %v1866_v19, %v1636_v24 }
0x2406   :  { %v1641_v29 = vsel %vm1640_vm14, %v1866_v19, %v1637_v27 }
0x2407   :  { %v1642_v30 = vmul.f32 %v1641_v29, %v1501_v25 }
0x2409   :  { %v1644_v58 = vperm.slane %v1642_v30, 0  ;;  %v1647_v0 = vmul.f32 %v1642_v30, %v1619_v13 }
0x240b   :  { %v1648_v2 = vsub.f32 %v1502_v31, %v1647_v0  ;;  %v1646_v7 = vmul.f32 %v1644_v58, %v1611_v56 }
0x240d   :  { %v1650_v33 = vperm.slane %v1648_v2, 0 }
0x240f   :  { %v1652_v1 = vadd.f32 %v1650_v33, %v1646_v7 }
0x2411   :  { %1725 = vmatmul.msk.f32.vlgmr.msra.gmra.mxu2 %vm1511_vm6, %v1652_v1 }
0x2494   :  { %v1676_v3 = vpop.f32.mrf.mxu2 }
0x2495   :  { %v1677_v37 = vadd.f32 %v1748_v36, %v1676_v3 }
0x2497   :  { %v1679_v38 = vmax.f32 %v1677_v37, 0.0 }
0x2499   :  { %1680 = vst [vmem:[#allocation13] sm:$0x3] %v1679_v38 }
0x249a   :  { %1691 = dma.vmem_to_hbm [thread:$0]  %s1687_s20, 32, %s1689_s25, [#allocation4]  }
0x249b   :  { %2046 = dma.done.wait [#allocation4], 32  }
0x249c   :  { %2047 = vsyncadd [#allocation4], 4294967264 }
0x249d   :  { %1696 = vsyncpa [#allocation3], 1 }
0x249e   :  { %1697 = vsyncpa [#allocation6], 1 }
0x249f   :  { %1698 = vsyncpa [#allocation9], 1 }
0x24a0   :  { %1699 = vsyncpa [#allocation12], 1 }
0x24a1   :  { %1700 = vsyncpa [#allocation4], 1 }

</bundles_post_ra>
